<compile_context>
chip_gen: v7x
topology: tpu7x:2x2x1
jax: 0.10.0
libtpu: 0.0.40
codegen_flags: <defaults>
</compile_context>

<pallas_src>
import math
from functools import partial

import jax
import jax.numpy as jnp
import numpy as np
from jax.experimental import pallas as pl
from jax.experimental.pallas import tpu as pltpu

EPS = 1e-6


# ------------------------------ fused kernel --------------------------------

def _decoder_layer_kernel(
    x_ref, mask_ref,
    a1_ref, b1_ref, a2_ref, b2_ref,
    wqkv_ref, bqkv_ref, wo_ref, bo_ref,
    o_ref,
    *, heads, eps,
):
    S, D = x_ref.shape
    dk = D // heads
    inv_sqrt_dk = 1.0 / math.sqrt(dk)
    compute_dtype = wqkv_ref.dtype            # bf16 in production; cast once in wrapper

    # Loaded once per grid step; shared by both attention blocks.
    mask_is_zero = mask_ref[...] == 0.0       # (S, S) bool
    wqkv = wqkv_ref[...]                      # (D, 3D) compute dtype, no per-step cast
    wo = wo_ref[...]                          # (D, D)  compute dtype
    bqkv = bqkv_ref[...]                      # (1, 3D) f32
    bo = bo_ref[...]                          # (1, D)  f32

    def norm(x, alpha, bias):
        # torch-style: unbiased std (divide by D-1), eps added to std
        mean = jnp.mean(x, axis=-1, keepdims=True)
        diff = x - mean
        std = jnp.sqrt(jnp.sum(diff * diff, axis=-1, keepdims=True) / (D - 1))
        inv = 1.0 / (std + eps)               # (S, 1) reciprocal, broadcast multiply
        return alpha * (diff * inv) + bias

    def mha(xn):
        # Fused QKV projection: one deep (S,D)@(D,3D) MXU pass, f32 accumulation.
        qkv = jnp.dot(xn.astype(compute_dtype), wqkv,
                      preferred_element_type=jnp.float32) + bqkv          # (S, 3D) f32
        # Thirds at lane offsets 0 / D / 2D, then ONE reshape + transpose per
        # tensor to (H, S, dk) — no per-head strided slices.
        q = (qkv[:, :D] * inv_sqrt_dk).astype(compute_dtype)   # scale folded into q
        k = qkv[:, D:2 * D].astype(compute_dtype)
        v = qkv[:, 2 * D:].astype(compute_dtype)
        q = jnp.swapaxes(q.reshape(S, heads, dk), 0, 1)                   # (H, S, dk)
        k = jnp.swapaxes(k.reshape(S, heads, dk), 0, 1)
        v = jnp.swapaxes(v.reshape(S, heads, dk), 0, 1)

        # All-head scores in one batched MXU pass (contract dk, batch over H).
        s = jnp.einsum("hqd,hkd->hqk", q, k,
                       preferred_element_type=jnp.float32)                # (H, S, S)
        # Faithful to the source: masked_fill(mask == 0, 1e-09) on the raw scores.
        s = jnp.where(mask_is_zero[None, :, :], jnp.float32(1e-9), s)
        m = jnp.max(s, axis=-1, keepdims=True)
        e = jnp.exp(s - m)
        p = e / jnp.sum(e, axis=-1, keepdims=True)      # exact normalization (bf16 MXU downstream)

        attn = jnp.einsum("hqk,hkd->hqd", p.astype(compute_dtype), v,
                          preferred_element_type=jnp.float32)             # (H, S, dk)
        # Concat heads, then a single deep (S,D)@(D,D) output projection.
        concat = jnp.swapaxes(attn, 0, 1).reshape(S, D).astype(compute_dtype)
        return jnp.dot(concat, wo, preferred_element_type=jnp.float32) + bo

    x = x_ref[...].astype(jnp.float32)                                    # (S, D)
    x = mha(norm(x, a1_ref[...], b1_ref[...]))
    x = mha(norm(x, a2_ref[...], b2_ref[...]))
    o_ref[...] = x.astype(o_ref.dtype)                                    # lane-dense (S, D) store


# ------------------------------- wrapper -------------------------------------

def _vmem_limit_bytes():
    # ~3/4 of physical VMEM: ~96 MiB on 128 MiB v5e/v6e parts, ~48 MiB on 64 MiB v7x.
    try:
        cap = pltpu.get_tpu_info().vmem_capacity_bytes
    except Exception:
        cap = 64 * 1024 * 1024
    return int(cap * 3 // 4)


def decoder_layer(x, trg_mask, params, heads, compute_dtype=jnp.bfloat16):
    B, S, D = x.shape
    assert D % heads == 0
    p = params["attn1"]

    # Pre-transpose torch (out, in) weights to (in, out), fuse Q/K/V into one
    # (D, 3D) weight, and cast MXU operands to the compute dtype ONCE here
    # (biases stay f32 and are added after f32 accumulation).
    wqkv = jnp.concatenate([p["wq"].T, p["wk"].T, p["wv"].T], axis=1).astype(compute_dtype)
    bqkv = jnp.concatenate([p["bq"], p["bk"], p["bv"]]).reshape(1, 3 * D).astype(jnp.float32)
    wo = p["wo"].T.astype(compute_dtype)                                  # (D, D) (in, out)
    bo = p["bo"].reshape(1, D).astype(jnp.float32)
    mask2d = trg_mask[0, 0].astype(jnp.float32)                           # .expand() is a broadcast

    full2d = lambda b: (0, 0)
    # TODO(synk): pad D to a multiple of 128 and flash-tile the KV axis for
    # production S/D (see module docstring).
    return pl.pallas_call(
        partial(_decoder_layer_kernel, heads=heads, eps=EPS),
        out_shape=jax.ShapeDtypeStruct((B, S, D), x.dtype),
        grid=(B,),
        in_specs=[
            pl.BlockSpec((pl.Squeezed(), S, D), lambda b: (b, 0, 0)),     # x   -> kernel sees (S, D)
            pl.BlockSpec((S, S), full2d),                                 # mask
            pl.BlockSpec((1, D), full2d),                                 # norm1 alpha
            pl.BlockSpec((1, D), full2d),                                 # norm1 bias
            pl.BlockSpec((1, D), full2d),                                 # norm2 alpha
            pl.BlockSpec((1, D), full2d),                                 # norm2 bias
            pl.BlockSpec((D, 3 * D), full2d),                             # fused Wqkv (in, out)
            pl.BlockSpec((1, 3 * D), full2d),                             # fused bqkv
            pl.BlockSpec((D, D), full2d),                                 # Wo (in, out)
            pl.BlockSpec((1, D), full2d),                                 # bo
        ],
        out_specs=pl.BlockSpec((pl.Squeezed(), S, D), lambda b: (b, 0, 0)),
        compiler_params=pltpu.CompilerParams(
            dimension_semantics=("parallel",),
            vmem_limit_bytes=_vmem_limit_bytes(),
        ),
    )(x, mask2d,
      params["norm1_alpha"].reshape(1, D), params["norm1_bias"].reshape(1, D),
      params["norm2_alpha"].reshape(1, D), params["norm2_bias"].reshape(1, D),
      wqkv, bqkv, wo, bo)


# --------------------------- pure-JAX reference ------------------------------

def _ref_norm(x, a, b, eps=EPS):
    mean = x.mean(-1, keepdims=True)
    diff = x - mean
    std = jnp.sqrt((diff * diff).sum(-1, keepdims=True) / (x.shape[-1] - 1))
    return a * diff / (std + eps) + b


def _ref_mha(x, mask, p, heads):
    B, S, D = x.shape
    dk = D // heads

    def proj(w, b):
        y = x @ w.T + b
        return y.reshape(B, S, heads, dk).transpose(0, 2, 1, 3)

    q, k, v = proj(p["wq"], p["bq"]), proj(p["wk"], p["bk"]), proj(p["wv"], p["bv"])
    scores = jnp.einsum("bhqd,bhkd->bhqk", q, k) / math.sqrt(dk)
    scores = jnp.where(mask == 0, 1e-9, scores)
    probs = jax.nn.softmax(scores, axis=-1)
    out = jnp.einsum("bhqk,bhkd->bhqd", probs, v)
    concat = out.transpose(0, 2, 1, 3).reshape(B, S, D)
    return concat @ p["wo"].T + p["bo"]


def _ref_decoder(x, mask, params, heads):
    x2 = _ref_norm(x, params["norm1_alpha"], params["norm1_bias"])
    x = _ref_mha(x2, mask, params["attn1"], heads)
    x2 = _ref_norm(x, params["norm2_alpha"], params["norm2_bias"])
    x = _ref_mha(x2, mask, params["attn1"], heads)
    return x


# --------------------------------- main --------------------------------------

def init_params(key, d_model):
    ks = jax.random.split(key, 8)
    scale = 0.05
    attn1 = {
        "wq": scale * jax.random.normal(ks[0], (d_model, d_model), jnp.float32),
        "bq": scale * jax.random.normal(ks[1], (d_model,), jnp.float32),
        "wk": scale * jax.random.normal(ks[2], (d_model, d_model), jnp.float32),
        "bk": scale * jax.random.normal(ks[3], (d_model,), jnp.float32),
        "wv": scale * jax.random.normal(ks[4], (d_model, d_model), jnp.float32),
        "bv": scale * jax.random.normal(ks[5], (d_model,), jnp.float32),
        "wo": scale * jax.random.normal(ks[6], (d_model, d_model), jnp.float32),
        "bo": scale * jax.random.normal(ks[7], (d_model,), jnp.float32),
    }
    return {
        "norm1_alpha": jnp.ones((d_model,), jnp.float32),
        "norm1_bias": jnp.zeros((d_model,), jnp.float32),
        "norm2_alpha": jnp.ones((d_model,), jnp.float32),
        "norm2_bias": jnp.zeros((d_model,), jnp.float32),
        "attn1": attn1,
    }


if __name__ == "__main__":
    B, S, D, HEADS = 2, 8, 32, 4
    key = jax.random.PRNGKey(0)
    kx, kp = jax.random.split(key)

    x = jax.random.normal(kx, (B, S, D), jnp.float32)
    # causal target mask, shape (1, 1, S, S), {0, 1} float — broadcast over B, H
    trg_mask = jnp.tril(jnp.ones((S, S), jnp.float32))[None, None]

    params = init_params(kp, D)

    out = decoder_layer(x, trg_mask, params, HEADS)          # bf16 MXU, f32 accumulation
    out = jax.block_until_ready(out)

    ref = _ref_decoder(x, trg_mask, params, HEADS)           # f32 reference
    # Tolerance accounts for bf16 MXU operands (f32 accumulation) vs. f32 reference.
    np.testing.assert_allclose(np.asarray(out), np.asarray(ref), rtol=2e-2, atol=5e-3)

    print("KERNEL_OK")
</pallas_src>

<mosaic_0001>
module attributes {stable_mosaic.version = 11 : i64} {
  func.func @_decoder_layer_kernel(%arg0: i32, %arg1: memref<1x8x32xf32, #tpu.memory_space<vmem>>, %arg2: memref<8x8xf32, #tpu.memory_space<vmem>>, %arg3: memref<1x32xf32, #tpu.memory_space<vmem>>, %arg4: memref<1x32xf32, #tpu.memory_space<vmem>>, %arg5: memref<1x32xf32, #tpu.memory_space<vmem>>, %arg6: memref<1x32xf32, #tpu.memory_space<vmem>>, %arg7: memref<32x96xbf16, #tpu.memory_space<vmem>>, %arg8: memref<1x96xf32, #tpu.memory_space<vmem>>, %arg9: memref<32x32xbf16, #tpu.memory_space<vmem>>, %arg10: memref<1x32xf32, #tpu.memory_space<vmem>>, %arg11: memref<1x8x32xf32, #tpu.memory_space<vmem>>) attributes {dimension_semantics = [#tpu.dimension_semantics<parallel>], iteration_bounds = array<i64: 2>, scalar_prefetch = 0 : i64, scratch_operands = 0 : i64, tpu.core_type = #tpu.core_type<tc>, window_params = [{transform_indices = @transform_0, window_bounds = array<i64: 1, 8, 32>}, {pipeline_mode = #tpu.pipeline_mode<synchronous>, transform_indices = @transform_1, window_bounds = array<i64: 8, 8>}, {pipeline_mode = #tpu.pipeline_mode<synchronous>, transform_indices = @transform_2, window_bounds = array<i64: 1, 32>}, {pipeline_mode = #tpu.pipeline_mode<synchronous>, transform_indices = @transform_3, window_bounds = array<i64: 1, 32>}, {pipeline_mode = #tpu.pipeline_mode<synchronous>, transform_indices = @transform_4, window_bounds = array<i64: 1, 32>}, {pipeline_mode = #tpu.pipeline_mode<synchronous>, transform_indices = @transform_5, window_bounds = array<i64: 1, 32>}, {pipeline_mode = #tpu.pipeline_mode<synchronous>, transform_indices = @transform_6, window_bounds = array<i64: 32, 96>}, {pipeline_mode = #tpu.pipeline_mode<synchronous>, transform_indices = @transform_7, window_bounds = array<i64: 1, 96>}, {pipeline_mode = #tpu.pipeline_mode<synchronous>, transform_indices = @transform_8, window_bounds = array<i64: 32, 32>}, {pipeline_mode = #tpu.pipeline_mode<synchronous>, transform_indices = @transform_9, window_bounds = array<i64: 1, 32>}, {transform_indices = @transform_10, window_bounds = array<i64: 1, 8, 32>}]} {
    %c0 = arith.constant 0 : index
    %c0_0 = arith.constant 0 : index
    %0 = vector.load %arg2[%c0, %c0_0] : memref<8x8xf32, #tpu.memory_space<vmem>>, vector<8x8xf32>
    %cst = arith.constant 0.000000e+00 : f32
    %1 = vector.broadcast %cst : f32 to vector<8x8xf32>
    %2 = arith.cmpf oeq, %0, %1 : vector<8x8xf32>
    %c0_1 = arith.constant 0 : index
    %c0_2 = arith.constant 0 : index
    %3 = vector.load %arg7[%c0_1, %c0_2] : memref<32x96xbf16, #tpu.memory_space<vmem>>, vector<32x96xbf16>
    %c0_3 = arith.constant 0 : index
    %c0_4 = arith.constant 0 : index
    %4 = vector.load %arg9[%c0_3, %c0_4] : memref<32x32xbf16, #tpu.memory_space<vmem>>, vector<32x32xbf16>
    %c0_5 = arith.constant 0 : index
    %c0_6 = arith.constant 0 : index
    %5 = vector.load %arg8[%c0_5, %c0_6] : memref<1x96xf32, #tpu.memory_space<vmem>>, vector<1x96xf32>
    %c0_7 = arith.constant 0 : index
    %c0_8 = arith.constant 0 : index
    %6 = vector.load %arg10[%c0_7, %c0_8] : memref<1x32xf32, #tpu.memory_space<vmem>>, vector<1x32xf32>
    %c0_9 = arith.constant 0 : index
    %c0_10 = arith.constant 0 : index
    %c0_11 = arith.constant 0 : index
    %7 = vector.load %arg1[%c0_9, %c0_10, %c0_11] : memref<1x8x32xf32, #tpu.memory_space<vmem>>, vector<1x8x32xf32>
    %8 = vector.shape_cast %7 : vector<1x8x32xf32> to vector<8x32xf32>
    %c0_12 = arith.constant 0 : index
    %c0_13 = arith.constant 0 : index
    %9 = vector.load %arg3[%c0_12, %c0_13] : memref<1x32xf32, #tpu.memory_space<vmem>>, vector<1x32xf32>
    %c0_14 = arith.constant 0 : index
    %c0_15 = arith.constant 0 : index
    %10 = vector.load %arg4[%c0_14, %c0_15] : memref<1x32xf32, #tpu.memory_space<vmem>>, vector<1x32xf32>
    %cst_16 = arith.constant dense<0.000000e+00> : vector<8xf32>
    %11 = vector.multi_reduction <add>, %8, %cst_16 [1] : vector<8x32xf32> to vector<8xf32>
    %12 = vector.shape_cast %11 : vector<8xf32> to vector<8x1xf32>
    %cst_17 = arith.constant 3.200000e+01 : f32
    %13 = vector.broadcast %cst_17 : f32 to vector<8x1xf32>
    %14 = arith.divf %12, %13 : vector<8x1xf32>
    %15 = vector.broadcast %14 : vector<8x1xf32> to vector<8x32xf32>
    %16 = arith.subf %8, %15 : vector<8x32xf32>
    %17 = arith.mulf %16, %16 : vector<8x32xf32>
    %cst_18 = arith.constant dense<0.000000e+00> : vector<8xf32>
    %18 = vector.multi_reduction <add>, %17, %cst_18 [1] : vector<8x32xf32> to vector<8xf32>
    %19 = vector.shape_cast %18 : vector<8xf32> to vector<8x1xf32>
    %cst_19 = arith.constant 3.100000e+01 : f32
    %20 = vector.broadcast %cst_19 : f32 to vector<8x1xf32>
    %21 = arith.divf %19, %20 : vector<8x1xf32>
    %22 = math.sqrt %21 : vector<8x1xf32>
    %cst_20 = arith.constant 9.99999997E-7 : f32
    %23 = vector.broadcast %cst_20 : f32 to vector<8x1xf32>
    %24 = arith.addf %22, %23 : vector<8x1xf32>
    %cst_21 = arith.constant 1.000000e+00 : f32
    %25 = vector.broadcast %cst_21 : f32 to vector<8x1xf32>
    %26 = arith.divf %25, %24 : vector<8x1xf32>
    %27 = vector.broadcast %26 : vector<8x1xf32> to vector<8x32xf32>
    %28 = arith.mulf %16, %27 : vector<8x32xf32>
    %29 = vector.broadcast %9 : vector<1x32xf32> to vector<8x32xf32>
    %30 = arith.mulf %29, %28 : vector<8x32xf32>
    %31 = vector.broadcast %10 : vector<1x32xf32> to vector<8x32xf32>
    %32 = arith.addf %30, %31 : vector<8x32xf32>
    %33 = arith.truncf %32 : vector<8x32xf32> to vector<8x32xbf16>
    %cst_22 = arith.constant dense<0.000000e+00> : vector<8x96xf32>
    %34 = tpu.matmul %33, %3, %cst_22 {dimension_numbers = #tpu.dot_dimension_numbers<[1], [0], [0], [1], [0, 0, 1, 1], [], []>} : vector<8x32xbf16>, vector<32x96xbf16>, vector<8x96xf32> -> vector<8x96xf32>
    %35 = vector.broadcast %5 : vector<1x96xf32> to vector<8x96xf32>
    %36 = arith.addf %34, %35 : vector<8x96xf32>
    %37 = vector.extract_strided_slice %36 {offsets = [0, 0], sizes = [8, 32], strides = [1, 1]} : vector<8x96xf32> to vector<8x32xf32>
    %cst_23 = arith.constant 0.353553385 : f32
    %38 = vector.broadcast %cst_23 : f32 to vector<8x32xf32>
    %39 = arith.mulf %37, %38 : vector<8x32xf32>
    %40 = arith.truncf %39 : vector<8x32xf32> to vector<8x32xbf16>
    %41 = vector.extract_strided_slice %36 {offsets = [0, 32], sizes = [8, 32], strides = [1, 1]} : vector<8x96xf32> to vector<8x32xf32>
    %42 = arith.truncf %41 : vector<8x32xf32> to vector<8x32xbf16>
    %43 = vector.extract_strided_slice %36 {offsets = [0, 64], sizes = [8, 32], strides = [1, 1]} : vector<8x96xf32> to vector<8x32xf32>
    %44 = arith.truncf %43 : vector<8x32xf32> to vector<8x32xbf16>
    %45 = vector.shape_cast %40 : vector<8x32xbf16> to vector<8x4x8xbf16>
    %46 = tpu.transpose %45, [1, 0, 2] : vector<8x4x8xbf16> -> vector<4x8x8xbf16>
    %47 = vector.shape_cast %42 : vector<8x32xbf16> to vector<8x4x8xbf16>
    %48 = tpu.transpose %47, [1, 0, 2] : vector<8x4x8xbf16> -> vector<4x8x8xbf16>
    %49 = vector.shape_cast %44 : vector<8x32xbf16> to vector<8x4x8xbf16>
    %50 = tpu.transpose %49, [1, 0, 2] : vector<8x4x8xbf16> -> vector<4x8x8xbf16>
    "tpu.trace_start"() <{level = 10 : i32, message = "hqd,hkd->hqk"}> : () -> ()
    %cst_24 = arith.constant dense<0.000000e+00> : vector<4x8x8xf32>
    %51 = tpu.matmul %46, %48, %cst_24 {dimension_numbers = #tpu.dot_dimension_numbers<[2], [2], [1], [1], [0, 0, 0, 1, 1, 1], [0], [0]>} : vector<4x8x8xbf16>, vector<4x8x8xbf16>, vector<4x8x8xf32> -> vector<4x8x8xf32>
    "tpu.trace_stop"() : () -> ()
    %52 = vector.shape_cast %2 : vector<8x8xi1> to vector<1x8x8xi1>
    %cst_25 = arith.constant 9.99999971E-10 : f32
    %53 = vector.shape_cast %52 : vector<1x8x8xi1> to vector<1x8x8xi1>
    %54 = vector.broadcast %53 : vector<1x8x8xi1> to vector<4x8x8xi1>
    %55 = vector.broadcast %cst_25 : f32 to vector<4x8x8xf32>
    %56 = arith.select %54, %55, %51 : vector<4x8x8xi1>, vector<4x8x8xf32>
    %cst_26 = arith.constant dense<0xFF800000> : vector<4x8xf32>
    %57 = vector.multi_reduction <maximumf>, %56, %cst_26 [2] : vector<4x8x8xf32> to vector<4x8xf32>
    %58 = vector.shape_cast %57 : vector<4x8xf32> to vector<4x8x1xf32>
    %59 = vector.broadcast %58 : vector<4x8x1xf32> to vector<4x8x8xf32>
    %60 = arith.subf %56, %59 : vector<4x8x8xf32>
    %61 = math.exp %60 : vector<4x8x8xf32>
    %cst_27 = arith.constant dense<0.000000e+00> : vector<4x8xf32>
    %62 = vector.multi_reduction <add>, %61, %cst_27 [2] : vector<4x8x8xf32> to vector<4x8xf32>
    %63 = vector.shape_cast %62 : vector<4x8xf32> to vector<4x8x1xf32>
    %64 = vector.broadcast %63 : vector<4x8x1xf32> to vector<4x8x8xf32>
    %65 = arith.divf %61, %64 : vector<4x8x8xf32>
    %66 = arith.truncf %65 : vector<4x8x8xf32> to vector<4x8x8xbf16>
    "tpu.trace_start"() <{level = 10 : i32, message = "hqk,hkd->hqd"}> : () -> ()
    %cst_28 = arith.constant dense<0.000000e+00> : vector<4x8x8xf32>
    %67 = tpu.matmul %66, %50, %cst_28 {dimension_numbers = #tpu.dot_dimension_numbers<[2], [1], [1], [2], [0, 0, 0, 1, 1, 2], [0], [0]>} : vector<4x8x8xbf16>, vector<4x8x8xbf16>, vector<4x8x8xf32> -> vector<4x8x8xf32>
    "tpu.trace_stop"() : () -> ()
    %68 = tpu.transpose %67, [1, 0, 2] : vector<4x8x8xf32> -> vector<8x4x8xf32>
    %69 = vector.shape_cast %68 : vector<8x4x8xf32> to vector<8x32xf32>
    %70 = arith.truncf %69 : vector<8x32xf32> to vector<8x32xbf16>
    %cst_29 = arith.constant dense<0.000000e+00> : vector<8x32xf32>
    %71 = tpu.matmul %70, %4, %cst_29 {dimension_numbers = #tpu.dot_dimension_numbers<[1], [0], [0], [1], [0, 0, 1, 1], [], []>} : vector<8x32xbf16>, vector<32x32xbf16>, vector<8x32xf32> -> vector<8x32xf32>
    %72 = vector.broadcast %6 : vector<1x32xf32> to vector<8x32xf32>
    %73 = arith.addf %71, %72 : vector<8x32xf32>
    %c0_30 = arith.constant 0 : index
    %c0_31 = arith.constant 0 : index
    %74 = vector.load %arg5[%c0_30, %c0_31] : memref<1x32xf32, #tpu.memory_space<vmem>>, vector<1x32xf32>
    %c0_32 = arith.constant 0 : index
    %c0_33 = arith.constant 0 : index
    %75 = vector.load %arg6[%c0_32, %c0_33] : memref<1x32xf32, #tpu.memory_space<vmem>>, vector<1x32xf32>
    %cst_34 = arith.constant dense<0.000000e+00> : vector<8xf32>
    %76 = vector.multi_reduction <add>, %73, %cst_34 [1] : vector<8x32xf32> to vector<8xf32>
    %77 = vector.shape_cast %76 : vector<8xf32> to vector<8x1xf32>
    %cst_35 = arith.constant 3.200000e+01 : f32
    %78 = vector.broadcast %cst_35 : f32 to vector<8x1xf32>
    %79 = arith.divf %77, %78 : vector<8x1xf32>
    %80 = vector.broadcast %79 : vector<8x1xf32> to vector<8x32xf32>
    %81 = arith.subf %73, %80 : vector<8x32xf32>
    %82 = arith.mulf %81, %81 : vector<8x32xf32>
    %cst_36 = arith.constant dense<0.000000e+00> : vector<8xf32>
    %83 = vector.multi_reduction <add>, %82, %cst_36 [1] : vector<8x32xf32> to vector<8xf32>
    %84 = vector.shape_cast %83 : vector<8xf32> to vector<8x1xf32>
    %cst_37 = arith.constant 3.100000e+01 : f32
    %85 = vector.broadcast %cst_37 : f32 to vector<8x1xf32>
    %86 = arith.divf %84, %85 : vector<8x1xf32>
    %87 = math.sqrt %86 : vector<8x1xf32>
    %cst_38 = arith.constant 9.99999997E-7 : f32
    %88 = vector.broadcast %cst_38 : f32 to vector<8x1xf32>
    %89 = arith.addf %87, %88 : vector<8x1xf32>
    %cst_39 = arith.constant 1.000000e+00 : f32
    %90 = vector.broadcast %cst_39 : f32 to vector<8x1xf32>
    %91 = arith.divf %90, %89 : vector<8x1xf32>
    %92 = vector.broadcast %91 : vector<8x1xf32> to vector<8x32xf32>
    %93 = arith.mulf %81, %92 : vector<8x32xf32>
    %94 = vector.broadcast %74 : vector<1x32xf32> to vector<8x32xf32>
    %95 = arith.mulf %94, %93 : vector<8x32xf32>
    %96 = vector.broadcast %75 : vector<1x32xf32> to vector<8x32xf32>
    %97 = arith.addf %95, %96 : vector<8x32xf32>
    %98 = arith.truncf %97 : vector<8x32xf32> to vector<8x32xbf16>
    %cst_40 = arith.constant dense<0.000000e+00> : vector<8x96xf32>
    %99 = tpu.matmul %98, %3, %cst_40 {dimension_numbers = #tpu.dot_dimension_numbers<[1], [0], [0], [1], [0, 0, 1, 1], [], []>} : vector<8x32xbf16>, vector<32x96xbf16>, vector<8x96xf32> -> vector<8x96xf32>
    %100 = vector.broadcast %5 : vector<1x96xf32> to vector<8x96xf32>
    %101 = arith.addf %99, %100 : vector<8x96xf32>
    %102 = vector.extract_strided_slice %101 {offsets = [0, 0], sizes = [8, 32], strides = [1, 1]} : vector<8x96xf32> to vector<8x32xf32>
    %cst_41 = arith.constant 0.353553385 : f32
    %103 = vector.broadcast %cst_41 : f32 to vector<8x32xf32>
    %104 = arith.mulf %102, %103 : vector<8x32xf32>
    %105 = arith.truncf %104 : vector<8x32xf32> to vector<8x32xbf16>
    %106 = vector.extract_strided_slice %101 {offsets = [0, 32], sizes = [8, 32], strides = [1, 1]} : vector<8x96xf32> to vector<8x32xf32>
    %107 = arith.truncf %106 : vector<8x32xf32> to vector<8x32xbf16>
    %108 = vector.extract_strided_slice %101 {offsets = [0, 64], sizes = [8, 32], strides = [1, 1]} : vector<8x96xf32> to vector<8x32xf32>
    %109 = arith.truncf %108 : vector<8x32xf32> to vector<8x32xbf16>
    %110 = vector.shape_cast %105 : vector<8x32xbf16> to vector<8x4x8xbf16>
    %111 = tpu.transpose %110, [1, 0, 2] : vector<8x4x8xbf16> -> vector<4x8x8xbf16>
    %112 = vector.shape_cast %107 : vector<8x32xbf16> to vector<8x4x8xbf16>
    %113 = tpu.transpose %112, [1, 0, 2] : vector<8x4x8xbf16> -> vector<4x8x8xbf16>
    %114 = vector.shape_cast %109 : vector<8x32xbf16> to vector<8x4x8xbf16>
    %115 = tpu.transpose %114, [1, 0, 2] : vector<8x4x8xbf16> -> vector<4x8x8xbf16>
    "tpu.trace_start"() <{level = 10 : i32, message = "hqd,hkd->hqk"}> : () -> ()
    %cst_42 = arith.constant dense<0.000000e+00> : vector<4x8x8xf32>
    %116 = tpu.matmul %111, %113, %cst_42 {dimension_numbers = #tpu.dot_dimension_numbers<[2], [2], [1], [1], [0, 0, 0, 1, 1, 1], [0], [0]>} : vector<4x8x8xbf16>, vector<4x8x8xbf16>, vector<4x8x8xf32> -> vector<4x8x8xf32>
    "tpu.trace_stop"() : () -> ()
    %117 = vector.shape_cast %2 : vector<8x8xi1> to vector<1x8x8xi1>
    %cst_43 = arith.constant 9.99999971E-10 : f32
    %118 = vector.shape_cast %117 : vector<1x8x8xi1> to vector<1x8x8xi1>
    %119 = vector.broadcast %118 : vector<1x8x8xi1> to vector<4x8x8xi1>
    %120 = vector.broadcast %cst_43 : f32 to vector<4x8x8xf32>
    %121 = arith.select %119, %120, %116 : vector<4x8x8xi1>, vector<4x8x8xf32>
    %cst_44 = arith.constant dense<0xFF800000> : vector<4x8xf32>
    %122 = vector.multi_reduction <maximumf>, %121, %cst_44 [2] : vector<4x8x8xf32> to vector<4x8xf32>
    %123 = vector.shape_cast %122 : vector<4x8xf32> to vector<4x8x1xf32>
    %124 = vector.broadcast %123 : vector<4x8x1xf32> to vector<4x8x8xf32>
    %125 = arith.subf %121, %124 : vector<4x8x8xf32>
    %126 = math.exp %125 : vector<4x8x8xf32>
    %cst_45 = arith.constant dense<0.000000e+00> : vector<4x8xf32>
    %127 = vector.multi_reduction <add>, %126, %cst_45 [2] : vector<4x8x8xf32> to vector<4x8xf32>
    %128 = vector.shape_cast %127 : vector<4x8xf32> to vector<4x8x1xf32>
    %129 = vector.broadcast %128 : vector<4x8x1xf32> to vector<4x8x8xf32>
    %130 = arith.divf %126, %129 : vector<4x8x8xf32>
    %131 = arith.truncf %130 : vector<4x8x8xf32> to vector<4x8x8xbf16>
    "tpu.trace_start"() <{level = 10 : i32, message = "hqk,hkd->hqd"}> : () -> ()
    %cst_46 = arith.constant dense<0.000000e+00> : vector<4x8x8xf32>
    %132 = tpu.matmul %131, %115, %cst_46 {dimension_numbers = #tpu.dot_dimension_numbers<[2], [1], [1], [2], [0, 0, 0, 1, 1, 2], [0], [0]>} : vector<4x8x8xbf16>, vector<4x8x8xbf16>, vector<4x8x8xf32> -> vector<4x8x8xf32>
    "tpu.trace_stop"() : () -> ()
    %133 = tpu.transpose %132, [1, 0, 2] : vector<4x8x8xf32> -> vector<8x4x8xf32>
    %134 = vector.shape_cast %133 : vector<8x4x8xf32> to vector<8x32xf32>
    %135 = arith.truncf %134 : vector<8x32xf32> to vector<8x32xbf16>
    %cst_47 = arith.constant dense<0.000000e+00> : vector<8x32xf32>
    %136 = tpu.matmul %135, %4, %cst_47 {dimension_numbers = #tpu.dot_dimension_numbers<[1], [0], [0], [1], [0, 0, 1, 1], [], []>} : vector<8x32xbf16>, vector<32x32xbf16>, vector<8x32xf32> -> vector<8x32xf32>
    %137 = vector.broadcast %6 : vector<1x32xf32> to vector<8x32xf32>
    %138 = arith.addf %136, %137 : vector<8x32xf32>
    %c0_48 = arith.constant 0 : index
    %c0_49 = arith.constant 0 : index
    %c0_50 = arith.constant 0 : index
    %139 = vector.load %arg11[%c0_48, %c0_49, %c0_50] : memref<1x8x32xf32, #tpu.memory_space<vmem>>, vector<1x8x32xf32>
    %140 = vector.shape_cast %139 : vector<1x8x32xf32> to vector<8x32xf32>
    %141 = vector.shape_cast %138 : vector<8x32xf32> to vector<1x8x32xf32>
    tpu.vector_store %arg11[%c0_48, %c0_49, %c0_50], %141 {strides = array<i32>} : memref<1x8x32xf32, #tpu.memory_space<vmem>>, vector<1x8x32xf32>,
    return
  }
  func.func @transform_0(%arg0: i32) -> (i32, i32, i32) {
    %c0_i32 = arith.constant 0 : i32
    %c0_i32_0 = arith.constant 0 : i32
    %c0_i32_1 = arith.constant 0 : i32
    return %arg0, %c0_i32, %c0_i32_0 : i32, i32, i32
  }
  func.func @transform_1(%arg0: i32) -> (i32, i32) {
    %c0_i32 = arith.constant 0 : i32
    %c0_i32_0 = arith.constant 0 : i32
    %c0_i32_1 = arith.constant 0 : i32
    return %c0_i32, %c0_i32_0 : i32, i32
  }
  func.func @transform_2(%arg0: i32) -> (i32, i32) {
    %c0_i32 = arith.constant 0 : i32
    %c0_i32_0 = arith.constant 0 : i32
    %c0_i32_1 = arith.constant 0 : i32
    return %c0_i32, %c0_i32_0 : i32, i32
  }
  func.func @transform_3(%arg0: i32) -> (i32, i32) {
    %c0_i32 = arith.constant 0 : i32
    %c0_i32_0 = arith.constant 0 : i32
    %c0_i32_1 = arith.constant 0 : i32
    return %c0_i32, %c0_i32_0 : i32, i32
  }
  func.func @transform_4(%arg0: i32) -> (i32, i32) {
    %c0_i32 = arith.constant 0 : i32
    %c0_i32_0 = arith.constant 0 : i32
    %c0_i32_1 = arith.constant 0 : i32
    return %c0_i32, %c0_i32_0 : i32, i32
  }
  func.func @transform_5(%arg0: i32) -> (i32, i32) {
    %c0_i32 = arith.constant 0 : i32
    %c0_i32_0 = arith.constant 0 : i32
    %c0_i32_1 = arith.constant 0 : i32
    return %c0_i32, %c0_i32_0 : i32, i32
  }
  func.func @transform_6(%arg0: i32) -> (i32, i32) {
    %c0_i32 = arith.constant 0 : i32
    %c0_i32_0 = arith.constant 0 : i32
    %c0_i32_1 = arith.constant 0 : i32
    return %c0_i32, %c0_i32_0 : i32, i32
  }
  func.func @transform_7(%arg0: i32) -> (i32, i32) {
    %c0_i32 = arith.constant 0 : i32
    %c0_i32_0 = arith.constant 0 : i32
    %c0_i32_1 = arith.constant 0 : i32
    return %c0_i32, %c0_i32_0 : i32, i32
  }
  func.func @transform_8(%arg0: i32) -> (i32, i32) {
    %c0_i32 = arith.constant 0 : i32
    %c0_i32_0 = arith.constant 0 : i32
    %c0_i32_1 = arith.constant 0 : i32
    return %c0_i32, %c0_i32_0 : i32, i32
  }
  func.func @transform_9(%arg0: i32) -> (i32, i32) {
    %c0_i32 = arith.constant 0 : i32
    %c0_i32_0 = arith.constant 0 : i32
    %c0_i32_1 = arith.constant 0 : i32
    return %c0_i32, %c0_i32_0 : i32, i32
  }
  func.func @transform_10(%arg0: i32) -> (i32, i32, i32) {
    %c0_i32 = arith.constant 0 : i32
    %c0_i32_0 = arith.constant 0 : i32
    %c0_i32_1 = arith.constant 0 : i32
    return %arg0, %c0_i32, %c0_i32_0 : i32, i32, i32
  }
}

</mosaic_0001>

<bundles_post_ra>
// kernel: tpu_custom_call.1
= control target key start
LH: loop header
LB: loop body
LE: loop exit
PB: predicated region body
PF: predicated region fallthrough
CT: control target
= control target key end

     0   :  { %s4259_s0 = inlined_call_operand.hbm [shape: f32[2,8,32], index: 0, kind: input, shape index: {}]   ;;  %s4260_s1 = inlined_call_operand.hbm [shape: f32[8,8], index: 1, kind: input, shape index: {}]   ;;  %s4261_s2 = inlined_call_operand.vmem [shape: f32[1,32], index: 2, kind: input, shape index: {}]   ;;  %s4262_s3 = inlined_call_operand.vmem [shape: f32[1,32], index: 3, kind: input, shape index: {}]   ;;  %s4263_s4 = inlined_call_operand.vmem [shape: f32[1,32], index: 4, kind: input, shape index: {}]   ;;  %s4264_s5 = inlined_call_operand.vmem [shape: f32[1,32], index: 5, kind: input, shape index: {}]   ;;  %s4265_s6 = inlined_call_operand.vmem [shape: bf16[32,96], index: 6, kind: input, shape index: {}]   ;;  %s4266_s7 = inlined_call_operand.vmem [shape: f32[1,96], index: 7, kind: input, shape index: {}]   ;;  %s4267_s8 = inlined_call_operand.hbm [shape: bf16[32,32], index: 8, kind: input, shape index: {}]   ;;  %s4268_s9 = inlined_call_operand.vmem [shape: f32[1,32], index: 9, kind: input, shape index: {}]   ;;  %s4269_s10 = inlined_call_operand.hbm [shape: f32[2,8,32], index: 10, kind: output, shape index: {}]  }
   0x1   :  { %4274 = sst [smem:[#allocation12_spill]] %s4260_s1 }
   0x2   :  { %4275 = sst [smem:[#allocation13_spill]] %s4267_s8 }
   0x3   :  { %15 = vsyncpa [#allocation3], 0 }
   0x4   :  { %17 = vsyncpa [#allocation3 + $0x1], 0 }
   0x5   :  { %18 = vsyncpa [#allocation6], 0 }
   0x6   :  { %19 = vsyncpa [#allocation4], 0 }
   0x7   :  { %21 = vsyncpa [#allocation4 + $0x1], 0  ;;  %s3573_s13 = smov 0   ;;  %s3575_s14 = smov 0  }
   0x8   :  { %s3577_s15 = smov 0   ;;  %s3579_s16 = smov 0  }
   0x9 LB: > { %s3594_s17 = sadd.s32 4294967295, %s3497_s16   ;;  %s2993_s18 = sadd.s32 4294967294, %s3497_s16   ;;  %s3497_s16 = sphi %s3579_s16, %s4295_s16   ;;  %s3493_s15 = sphi %s3577_s15, %s4294_s15   ;;  %s3489_s14 = sphi %s3575_s14, %s4293_s14   ;;  %s3485_s13 = sphi %s3573_s13, %s4292_s13  }
   0xa   : > { %p47_p0 = scmp.ne.s32.totalorder %s3489_s14, %s3485_s13  ;;  %p4270_p1 = scmp.eq.s32.totalorder %s3594_s17, 0 }
   0xb   : > { %p266_p3 = scmp.eq.s32.totalorder %s2993_s18, 1  ;;  %p2994_p5 = scmp.ge.s32.totalorder %s3497_s16, 1 }
   0xc   : > { %p3603_p4 = por %p4270_p1, %p47_p0  ;;  %p273_p7 = scmp.lt.s32.totalorder %s3497_s16, 3 }
   0xd   : > { %p3608_p6 = por %p266_p3, %p47_p0  ;;  %s3499_s22 = smov [#allocation5]  }
   0xe   : > { %s4276_s19 = scalar_select %p3603_p4, 1, 0 }
   0xf   : > { %s4277_s20 = scalar_select %p3608_p6, 1, 0 }
  0x10   : > { %p3613_p8 = pnand %p2994_p5, %p273_p7  ;;  %s286_s23 = sshll.u32 %s3499_s22, 4  ;;  %s287_s23 = int_to_ptr.vmem [resolvable:$true] %s286_s23 }
  0x11   : > { %s3500_s24 = smov [#allocation7]   ;;  %s4280_s1 = sld [smem:[#allocation12_spill]] }
  0x12   : > { %s4278_s21 = scalar_select %p3613_p8, 1, 0 }
  0x13   : > { %p3227_p10 = pneg %p3613_p8  ;;  %s314_s25 = sshll.u32 %s3500_s24, 4  ;;  %s3626_s25 = int_to_ptr.vmem [resolvable:$true] %s314_s25 }
  0x15   : > { %p3622_p11 = pnand %p3227_p10, %p4270_p1 }
  0x17   : > { %s3341_s29 = scalar_lea.hbm %s4280_s1, 128  ;;  %p3343_p13 = pneg %p3622_p11 }
  0x18   : > { %p3342_p12 = scmp.ne.s32.totalorder %s4280_s1, %s3341_s29  ;;  %p3348_p5 = scmp.lt.u32.totalorder %s3341_s29, %s4280_s1 }
  0x1a   : > { %p3344_p0 = pnand %p3343_p13, %p3342_p12 }
  0x1c   : > { %p3345_p3 = pneg %p3344_p0 }
  0x1e   : > { %p3350_p7 = pnand %p3348_p5, %p3345_p3 }
  0x20   : > { %3353 = shalt.err (!%p3350_p7)
}
  0x21   : > { %s3354_s22 = scalar_lea.vmem %s287_s23, 128  ;;  %p3362_p2 = scmp.lt.s32.totalorder %s287_s23, %s287_s23 }
  0x22   : > { %p3355_p10 = scmp.ne.s32.totalorder %s287_s23, %s3354_s22  ;;  %p3363_p6 = scmp.lt.s32.totalorder %s3354_s22, %s3354_s22 }
  0x24   : > { %p3357_p9 = pnand %p3355_p10, %p3343_p13  ;;  %p3364_p4 = por %p3363_p6, %p3362_p2 }
  0x26   : > { %p3358_p1 = pneg %p3357_p9 }
  0x28   : > { %p3365_p8 = pnand %p3364_p4, %p3358_p1 }
  0x2a   : > { %3368 = shalt.err (!%p3365_p8)
}
  0x2b   : > { %3230 = dma.hbm_to_vmem [thread:$0]  (!%p3622_p11), %s4280_s1, 128, %s287_s23, [#allocation6]  }
  0x2c   : > { %s4281_s8 = sld [smem:[#allocation13_spill]] }
  0x32   : > { %s3369_s30 = scalar_lea.hbm %s4281_s8, 256 }
  0x33   : > { %p3370_p9 = scmp.ne.s32.totalorder %s4281_s8, %s3369_s30  ;;  %p3376_p4 = scmp.lt.u32.totalorder %s3369_s30, %s4281_s8 }
  0x35   : > { %p3372_p2 = pnand %p3370_p9, %p3343_p13 }
  0x37   : > { %p3373_p1 = pneg %p3372_p2 }
  0x39   : > { %p3378_p6 = pnand %p3376_p4, %p3373_p1 }
  0x3b   : > { %3381 = shalt.err (!%p3378_p6)
}
  0x3c   : > { %s3382_s23 = scalar_lea.vmem %s3626_s25, 256  ;;  %p3390_p3 = scmp.lt.s32.totalorder %s3626_s25, %s3626_s25 }
  0x3d   : > { %p3383_p8 = scmp.ne.s32.totalorder %s3626_s25, %s3382_s23  ;;  %p3391_p5 = scmp.lt.s32.totalorder %s3382_s23, %s3382_s23 }
  0x3f   : > { %p3385_p12 = pnand %p3383_p8, %p3343_p13  ;;  %p3392_p7 = por %p3391_p5, %p3390_p3 }
  0x41   : > { %p3386_p0 = pneg %p3385_p12 }
  0x43   : > { %p3393_p10 = pnand %p3392_p7, %p3386_p0 }
  0x45   : > { %3396 = shalt.err (!%p3393_p10)
}
  0x46   : > { %s3501_s24 = smov 64   ;;  %s3502_s27 = smov 4  }
  0x47   : > { %3233 = dma.hbm_to_vmem [thread:$0]  (!%p3622_p11), %s4281_s8, 256, %s3626_s25, [#allocation6], %s3501_s24, %s3501_s24, %s3502_s27  }
  0x48   : > { %s3676_s30 = sadd.s32 1, %s3497_s16   ;;  %s34_s11 = sadd.s32 1, %s3493_s15 }
  0x49   : > { %s31_s12 = ssub.s32 %s3497_s16, %s3676_s30  ;;  %p41_p13 = scmp.ne.s32.totalorder %s3493_s15, %s3489_s14 }
  0x4a   : > { %p32_p9 = scmp.eq.s32.totalorder %s31_s12, 0  ;;  %p42_p2 = scmp.eq.s32.totalorder %s3497_s16, 0 }
  0x4b   : > { %p4282_p1 = scmp.eq.s32.totalorder %s3594_s17, 1  ;;  %p3244_p6 = scmp.lt.s32.totalorder %s3497_s16, 2 }
  0x4c   : > { %s3692_s22 = scalar_select %p32_p9, %s3493_s15, %s34_s11  }
  0x4d   : > { %p3686_p4 = por %p4282_p1, %p41_p13  ;;  %p43_p8 = por %p42_p2, %p41_p13 }
  0x4e   : > { %s331_s26 = sand.u32 1, %s3493_s15   ;;  %s2999_s25 = sshll.u32 %s3497_s16, 7 }
  0x4f   : > { %s2998_s23 = sshll.u32 %s331_s26, 3  ;;  %s3699_s28 = scalar_lea.hbm %s4259_s0, %s2999_s25 }
  0x50   : > { %s335_s29 = scalar_lea.vmem [#allocation2], %s2998_s23  ;;  %p3703_p11 = pnand %p3244_p6, %p43_p8 }
  0x51   : > { %s342_s12 = sshll.u32 %s335_s29, 4  ;;  %s332_s1 = scalar_lea.sflag [#allocation3], %s331_s26  ;;  %s3701_s12 = int_to_ptr.vmem [resolvable:$true] %s342_s12 }
  0x52   : > { %s3397_s8 = scalar_lea.hbm %s3699_s28, 128  ;;  %p3399_p0 = pneg %p3703_p11 }
  0x53   : > { %p3398_p12 = scmp.ne.s32.totalorder %s3699_s28, %s3397_s8  ;;  %s3402_s24 = scalar_lea.hbm %s4259_s0, 256 }
  0x54   : > { %p3403_p7 = scmp.lt.u32.totalorder %s3699_s28, %s4259_s0  ;;  %p3404_p10 = scmp.lt.u32.totalorder %s3402_s24, %s3397_s8 }
  0x55   : > { %p3400_p3 = pnand %p3399_p0, %p3398_p12  ;;  %p3406_p9 = scmp.lt.u32.totalorder %s3397_s8, %s3699_s28 }
  0x56   : > { %p3405_p13 = por %p3404_p10, %p3403_p7 }
  0x57   : > { %p3401_p5 = pneg %p3400_p3 }
  0x58   : > { %p3407_p2 = por %p3406_p9, %p3405_p13 }
  0x5a   : > { %p3408_p1 = pnand %p3407_p2, %p3401_p5 }
  0x5c   : > { %3411 = shalt.err (!%p3408_p1)
}
  0x5d   : > { %s3412_s26 = scalar_lea.vmem %s3701_s12, 128  ;;  %s3503_s25 = smov [#allocation2]  }
  0x5e   : > { %p3413_p6 = scmp.ne.s32.totalorder %s3701_s12, %s3412_s26  ;;  %s3417_s23 = sshll.u32 %s3503_s25, 4  ;;  %s3418_s23 = int_to_ptr.vmem [resolvable:$false] %s3417_s23 }
  0x5f   : > { %s3419_s27 = scalar_lea.vmem %s3418_s23, 256  ;;  %p3420_p3 = scmp.lt.s32.totalorder %s3701_s12, %s3418_s23 }
  0x60   : > { %p3415_p8 = pnand %p3413_p6, %p3399_p0  ;;  %p3421_p7 = scmp.lt.s32.totalorder %s3419_s27, %s3412_s26 }
  0x62   : > { %p3416_p12 = pneg %p3415_p8  ;;  %p3422_p10 = por %p3421_p7, %p3420_p3 }
  0x64   : > { %p3423_p13 = pnand %p3422_p10, %p3416_p12 }
  0x66   : > { %3426 = shalt.err (!%p3423_p13)
}
  0x67   : > { %3237 = dma.hbm_to_vmem [thread:$0]  (!%p3703_p11), %s3699_s28, 128, %s3701_s12, %s332_s1  }
  0x68   : > { %p4285_p5 = scmp.ne.s32.totalorder %s4278_s21, 0 }
  0x69   : > { %s3735_s8 = sand.u32 (!%p4285_p5), 1, %s3489_s14   ;;  %p4286_p0 = scmp.ne.s32.totalorder (!%p4285_p5), %s4276_s19, 0 }
  0x6a   : > { %351 = sbr.rel (%p4285_p5) target bundleno = 4064 (0xfe0), region = 60  ;;  %s4273_s24 = sshll.u32 (!%p4285_p5), %s3735_s8, 3 }
  0x6b   : > { %s354_s29 = scalar_lea.sflag (!%p4285_p5), [#allocation3], %s3735_s8  ;;  %s357_s26 = scalar_lea.vmem (!%p4285_p5), [#allocation2], %s4273_s24 }
  0x71   : > { %3472 = dma.done.wait (%p4286_p0), %s354_s29, 128  }
  0x72   : > { %3474 = vsyncadd (%p4286_p0), %s354_s29, 4294967168  ;;  %p4287_p11 = scmp.eq.s32.totalorder %s3594_s17, 0 }
  0x74   : > { %3476 = dma.done.wait (%p4287_p11), [#allocation6], 384   ;;  %p4288_p9 = pmov %p4287_p11 }
  0x75   : > { %vm418_vm0 = vcmask 261120   ;;  %v415_v0 = vld [vmem:[%s357_s26] sm:$0xff]  ;;  %v3504_v8 = vmov 0.0   ;;  %vm3505_vm1 = vmmov 0   ;;  %s3506_s26 = smov 104   ;;  %s3507_s1 = smov 120   ;;  %v531_v39 = vlaneseq }
  0x76   : > { %3478 = vsyncadd (%p4288_p9), [#allocation6], 4294966912  ;;  %v419_v1 = vsel %vm418_vm0, %v415_v0, 0.0  ;;  %v3754_v7 = vld [vmem:[%s4265_s6] sm:$0xff]   ;;  %3087 = vmatprep.subr.bf16.mxu0 %v3504_v8  ;;  %3091 = vmatprep.mubr.msk.bf16.mxu0 %vm3505_vm1, %v3504_v8  ;;  %v3763_v9 = vld [vmem:[%s4265_s6 + $0x8] sm:$0xff]   ;;  %s3508_s19 = smov 112  }
  0x77   : > { %420 = vadd.xlane.f32.xlu0 %v419_v1  ;;  %3088 = vmatpush3.bf16.msra.mxu0 %v3754_v7  ;;  %v3005_v19 = vld [vmem:[%s4261_s2] ss:$0 sm:$0xff]  ;;  %s3509_s21 = smov 96   ;;  %v3510_v37 = vmov 1983009808   ;;  %v532_v44 = vshrl.u32 %v531_v39, 7 }
  0x78   : > { %3095 = vmatprep.subr.bf16.mxu1 %v3504_v8  ;;  %3089 = vmatprep.subr.bf16.mxu0 %v3504_v8  ;;  %v3006_v21 = vld [vmem:[%s4262_s3] ss:$0 sm:$0xff]  ;;  %v529_v38 = vunpack.c.l.s4 %v3510_v37  ;;  %v3511_v41 = vmov 1934713408   ;;  %v3512_v60 = vmov 0   ;;  %vm1036_vm4 = vcmask 64512  }
  0x79   : > { %3097 = vmatprep.mubr.msk.bf16.mxu1 %vm3505_vm1, %v3504_v8  ;;  %v3783_v25 = vld [vmem:[%s4266_s7] ss:$0 sm:$0xff]  ;;  %v546_v42 = vunpack.c.l.s4 %v3511_v41  ;;  %s3513_s28 = smov 64   ;;  %vm1278_vm6 = vcmask 1043456   ;;  %s3514_s12 = smov 16   ;;  %vm1609_vm7 = vcmask 130048  }
  0x7a   : > { %v530_v43 = vunpack.c.0.s8 %v529_v38  ;;  %s3515_s11 = smov 8   ;;  %s3516_s25 = smov 24   ;;  %vm1611_vm8 = vcmask 195584  }
  0x7b   : > { %3090 = vmatpush3.bf16.msra.mxu0 %v3763_v9  ;;  %v547_v46 = vunpack.c.0.s8 %v546_v42  ;;  %s3040_s24 = sshll.u32 %s3594_s17, 7  ;;  %s2891_s17 = scalar_lea.sflag [#allocation4], %s3735_s8 }
  0x7c   : > { %3101 = vmatprep.subr.bf16.mxu0 %v3504_v8  ;;  %v3816_v47 = vsub.s32 %v530_v43, %v532_v44 }
  0x7d   : > { %v3819_v50 = vsub.s32 %v547_v46, %v532_v44 }
 0x104   : > { %v421_v2 = vpop.xlane.xlu0 %420 }
 0x105   : > { %v423_v3 = vmul.f32 0.03125, %v421_v2 }
 0x107   : > { %v424_v4 = vsub.f32 %v415_v0, %v423_v3 }
 0x109   : > { %v425_v5 = vmul.f32 %v424_v4, %v424_v4 }
 0x10b   : > { %v426_v6 = vsel %vm418_vm0, %v425_v5, 0.0 }
 0x10c   : > { %427 = vadd.xlane.f32.xlu0 %v426_v6 }
 0x199   : > { %v428_v10 = vpop.xlane.xlu0 %427 }
 0x19a   : > { %v430_v11 = vmul.f32 0.032258064, %v428_v10 }
 0x19c   : > { %3301 = vrsqrt.f32 %v430_v11  ;;  %vm433_vm2 = vcmp.eq.f32.partialorder %v430_v11, inf  ;;  %v436_v14 = vand.u32 2147483648, %v430_v11  ;;  %vm435_vm3 = vcmp.eq.f32.partialorder %v430_v11, 0.0 }
 0x1a6   : > { %v3302_v12 = vpop.eup %3301 }
 0x1a7   : > { %v432_v13 = vmul.f32 %v3302_v12, %v430_v11 }
 0x1a9   : > { %v434_v15 = vsel %vm433_vm2, %v430_v11, %v432_v13 }
 0x1aa   : > { %v437_v16 = vsel %vm435_vm3, %v436_v14, %v434_v15 }
 0x1ab   : > { %v438_v17 = vadd.f32 1e-06, %v437_v16 }
 0x1ad   : > { %3303 = vrcp.f32 %v438_v17 }
 0x1b7   : > { %v3304_v18 = vpop.eup %3303 }
 0x1b8   : > { %v441_v20 = vmul.f32 %v3304_v18, %v424_v4 }
 0x1ba   : > { %v448_v22 = vmul.f32 %v3005_v19, %v441_v20 }
 0x1bc   : > { %v455_v23 = vadd.f32 %v3006_v21, %v448_v22 }
 0x1be   : > { %v456_v24 = vpack.c.bf16 %v455_v23, %v455_v23 }
 0x1c0   : > { %3092 = vmatmul.mubr.msk.bf16.vlgmr.msra.gmra.mrb[0].mxu0 %vm418_vm0, %v456_v24 }
 0x1c1   : > { %3103 = vmatprep.mubr.msk.bf16.mxu0 %vm3505_vm1, %v3504_v8 }
 0x293   : > { %v512_v26 = vpop.f32.mrb[0].mxu0 }
 0x294   : > { %v513_v27 = vadd.f32 %v3783_v25, %v512_v26  ;;  %v3093_v28 = vpop.f32.mrb[1].mxu0 }
 0x295   : > { %v515_v29 = vpop.f32.mrb[2].mxu0 }
 0x296   : > { %v518_v30 = vmul.f32 0.35355338, %v513_v27  ;;  %v3786_v31 = vpack.c.bf16 %v513_v27, %v513_v27  ;;  %v3094_v32 = vpop.f32.mrb[3].mxu0 }
 0x298   : > { %694 = vrot.lane.b32.xlu0 %v3786_v31, %s3506_s26  ;;  %690 = vrot.lane.b32.xlu1 %v3786_v31, %s3507_s1  ;;  %v3792_v33 = vpack.c.bf16 %v518_v30, %v518_v30 }
 0x29a   : > { %v534_v39 = vrot.slane %v3792_v33, %v3816_v47 }
 0x29c   : > { %692 = vrot.lane.b32.xlu1 %v3786_v31, %s3508_s19  ;;  %526 = vrot.lane.b32.xlu0 %v3792_v33, %s3506_s26 }
 0x2a0   : > { %696 = vrot.lane.b32.xlu1 %v3786_v31, %s3509_s21 }
 0x30a   : > { %v3800_v34 = vpop.permute.xlu1 %690  ;;  %v3808_v36 = vpop.permute.xlu0 %694 }
 0x30b   : > { %698 = vrot.lane.b32.xlu1 %v3800_v34, %s3509_s21 }
 0x30e   : > { %v3804_v35 = vpop.permute.xlu1 %692  ;;  %v527_v57 = vpop.permute.xlu0 %526 }
 0x30f   : > { %700 = vrot.lane.b32.xlu1 %v3804_v35, %s3509_s21  ;;  %v576_v1 = vrot.slane %v527_v57, %v3816_v47 }
 0x312   : > { %v697_v40 = vpop.permute.xlu1 %696 }
 0x313   : > { %702 = vrot.lane.b32.xlu1 %v3808_v36, %s3509_s21  ;;  %v711_v49 = vrot.slane %v697_v40, %v3816_v47 }
 0x317   : > { %522 = vrot.lane.b32.xlu1 %v3792_v33, %s3507_s1 }
 0x31b   : > { %524 = vrot.lane.b32.xlu1 %v3792_v33, %s3508_s19 }
 0x37d   : > { %v699_v45 = vpop.permute.xlu1 %698 }
 0x37e   : > { %v745_v58 = vrot.slane %v699_v45, %v3816_v47 }
 0x381   : > { %v701_v48 = vpop.permute.xlu1 %700 }
 0x382   : > { %v719_v51 = vrot.slane %v701_v48, %v3816_v47 }
 0x384   : > { %v720_v52 = vcombine.low %v711_v49, %v719_v51  ;;  %v721_v53 = vcombine.high %v711_v49, %v719_v51 }
 0x385   : > { %v703_v54 = vpop.permute.xlu1 %702 }
 0x386   : > { %v728_v55 = vrot.slane %v720_v52, %v3819_v50  ;;  %v753_v56 = vrot.slane %v703_v54, %v3816_v47  ;;  %v735_v59 = vrot.slane %v721_v53, %v3819_v50 }
 0x388   : > { %v736_v61 = vcombine.high %v728_v55, %v3512_v60  ;;  %v754_v62 = vcombine.low %v745_v58, %v753_v56  ;;  %v755_v63 = vcombine.high %v745_v58, %v753_v56  ;;  %v737_v3 = vcombine.high %v735_v59, %v3512_v60 }
 0x389   : > { %v523_v0 = vpop.permute.xlu1 %522  ;;  %v776_v4 = vshrl.u32 %v728_v55, 16  ;;  %v792_v11 = vshrl.u32 %v735_v59, 16 }
 0x38a   : > { %v568_v2 = vrot.slane %v523_v0, %v3816_v47  ;;  %v762_v5 = vrot.slane %v754_v62, %v3819_v50  ;;  %v769_v6 = vrot.slane %v755_v63, %v3819_v50  ;;  %v784_v10 = vshrl.u32 %v736_v61, 16 }
 0x38b   : > { %v800_v28 = vshrl.u32 %v737_v3, 16 }
 0x38c   : > { %v577_v12 = vcombine.low %v568_v2, %v576_v1  ;;  %v578_v13 = vcombine.high %v568_v2, %v576_v1  ;;  %v770_v14 = vcombine.high %v762_v5, %v3512_v60  ;;  %v771_v15 = vcombine.high %v769_v6, %v3512_v60 }
 0x38d   : > { %v774_v16 = vpack.i.b16 %v762_v5, %v728_v55  ;;  %v777_v17 = vshrl.u32 %v762_v5, 16  ;;  %v790_v18 = vpack.i.b16 %v769_v6, %v735_v59  ;;  %v793_v19 = vshrl.u32 %v769_v6, 16  ;;  %v525_v27 = vpop.permute.xlu1 %524 }
 0x38e   : > { %v585_v20 = vrot.slane %v577_v12, %v3819_v50  ;;  %v592_v21 = vrot.slane %v578_v13, %v3819_v50  ;;  %v782_v23 = vpack.i.b16 %v770_v14, %v736_v61  ;;  %v785_v24 = vshrl.u32 %v770_v14, 16 }
 0x38f   : > { %v778_v22 = vpack.i.b16 %v777_v17, %v776_v4  ;;  %v798_v26 = vpack.i.b16 %v771_v15, %v737_v3  ;;  %v794_v29 = vpack.i.b16 %v793_v19, %v792_v11  ;;  %v801_v30 = vshrl.u32 %v771_v15, 16 }
 0x390   : > { %v786_v32 = vpack.i.b16 %v785_v24, %v784_v10  ;;  %v804_v37 = vcombine.low %v774_v16, %v790_v18  ;;  %v542_v40 = vrot.slane %v525_v27, %v3816_v47  ;;  %v593_v41 = vcombine.high %v585_v20, %v3512_v60 }
 0x391   : > { %v802_v38 = vpack.i.b16 %v801_v30, %v800_v28  ;;  %v594_v42 = vcombine.high %v592_v21, %v3512_v60  ;;  %v812_v43 = vcombine.low %v782_v23, %v798_v26  ;;  %v829_v44 = vcombine.low %v778_v22, %v794_v29 }
 0x392   : > { %v543_v45 = vcombine.low %v534_v39, %v542_v40  ;;  %v544_v46 = vcombine.high %v534_v39, %v542_v40  ;;  %v600_v49 = vshrl.u32 %v585_v20, 16  ;;  %v811_v51 = vrot.slane %v804_v37, %v3816_v47 }
 0x393   : > { %v837_v48 = vcombine.low %v786_v32, %v802_v38  ;;  %v819_v52 = vrot.slane %v812_v43, %v3816_v47  ;;  %v616_v53 = vshrl.u32 %v592_v21, 16  ;;  %v608_v56 = vshrl.u32 %v593_v41, 16 }
 0x394   : > { %v551_v54 = vrot.slane %v543_v45, %v3819_v50  ;;  %v558_v33 = vrot.slane %v544_v46, %v3819_v50  ;;  %v624_v57 = vshrl.u32 %v594_v42, 16  ;;  %v836_v59 = vrot.slane %v829_v44, %v3816_v47 }
 0x395   : > { %v844_v55 = vrot.slane %v837_v48, %v3816_v47  ;;  %v820_v58 = vcombine.low %v811_v51, %v819_v52 }
 0x396   : > { %v559_v61 = vcombine.high %v551_v54, %v3512_v60  ;;  %v560_v62 = vcombine.high %v558_v33, %v3512_v60  ;;  %v597_v63 = vpack.i.b16 %v585_v20, %v551_v54  ;;  %v599_v0 = vshrl.u32 %v551_v54, 16 }
 0x397   : > { %v613_v1 = vpack.i.b16 %v592_v21, %v558_v33  ;;  %v615_v2 = vshrl.u32 %v558_v33, 16  ;;  %v827_v3 = vrot.slane %v820_v58, %v3819_v50  ;;  %v845_v4 = vcombine.low %v836_v59, %v844_v55 }
 0x398   : > { %v601_v5 = vpack.i.b16 %v600_v49, %v599_v0  ;;  %v605_v6 = vpack.i.b16 %v593_v41, %v559_v61  ;;  %v607_v10 = vshrl.u32 %v559_v61, 16  ;;  %v621_v11 = vpack.i.b16 %v594_v42, %v560_v62  ;;  %v3881_v61 = vld [vmem:[#allocation5] sm:$0xff] }
 0x399   : > { %v617_v12 = vpack.i.b16 %v616_v53, %v615_v2  ;;  %v623_v13 = vshrl.u32 %v560_v62, 16  ;;  %v627_v14 = vcombine.low %v597_v63, %v613_v1  ;;  %v852_v15 = vrot.slane %v845_v4, %v3819_v50 }
 0x39a   : > { %v609_v16 = vpack.i.b16 %v608_v56, %v607_v10  ;;  %v635_v17 = vcombine.low %v605_v6, %v621_v11  ;;  %v857_v23 = vshrl.u32 %v827_v3, 16  ;;  %v828_v38 = vcombine.high %v827_v3, %v3512_v60 }
 0x39b   : > { %v625_v18 = vpack.i.b16 %v624_v57, %v623_v13  ;;  %v652_v19 = vcombine.low %v601_v5, %v617_v12  ;;  %v856_v20 = vpack.i.b16 %v852_v15, %v827_v3  ;;  %v634_v21 = vrot.slane %v627_v14, %v3816_v47 }
 0x39c   : > { %v642_v22 = vrot.slane %v635_v17, %v3816_v47  ;;  %v858_v24 = vshrl.u32 %v852_v15, 16  ;;  %v853_v28 = vcombine.high %v852_v15, %v3512_v60  ;;  %v863_v45 = vshrl.u32 %v828_v38, 16 }
 0x39d   : > { %v660_v26 = vcombine.low %v609_v16, %v625_v18  ;;  %v1041_v27 = vsel %vm1036_vm4, %v856_v20, 0  ;;  %v659_v32 = vrot.slane %v652_v19, %v3816_v47  ;;  %vm404_vm5 = vcmp.eq.f32.partialorder %v3881_v61, 0.0 }
 0x39e   : > { %3096 = vmatpush3.bf16.xpose.msra.mxu1 %v1041_v27  ;;  %v859_v29 = vpack.i.b16 %v858_v24, %v857_v23  ;;  %v643_v30 = vcombine.low %v634_v21, %v642_v22  ;;  %v864_v42 = vshrl.u32 %v853_v28, 16  ;;  %v862_v44 = vpack.i.b16 %v853_v28, %v828_v38 }
 0x39f   : > { %v667_v37 = vrot.slane %v660_v26, %v3816_v47  ;;  %3107 = vmatprep.subr.bf16.mxu1 %v3504_v8 }
 0x3a0   : > { %v1087_v39 = vsel %vm1036_vm4, %v859_v29, 0  ;;  %v650_v40 = vrot.slane %v643_v30, %v3819_v50  ;;  %v865_v51 = vpack.i.b16 %v864_v42, %v863_v45  ;;  %v1133_v52 = vsel %vm1036_vm4, %v862_v44, 0 }
 0x3a1   : > { %3102 = vmatpush3.bf16.xpose.msra.mxu0 %v1087_v39  ;;  %v668_v41 = vcombine.low %v659_v32, %v667_v37 }
 0x3a2   : > { %3113 = vmatprep.subr.bf16.mxu0 %v3504_v8  ;;  %v680_v48 = vshrl.u32 %v650_v40, 16  ;;  %v1179_v33 = vsel %vm1036_vm4, %v865_v51, 0  ;;  %v651_v55 = vcombine.high %v650_v40, %v3512_v60 }
 0x3a3   : > { %v675_v43 = vrot.slane %v668_v41, %v3819_v50 }
 0x3a4   : > { %v686_v58 = vshrl.u32 %v651_v55, 16 }
 0x3a5   : > { %v679_v46 = vpack.i.b16 %v675_v43, %v650_v40  ;;  %v681_v49 = vshrl.u32 %v675_v43, 16  ;;  %v676_v54 = vcombine.high %v675_v43, %v3512_v60 }
 0x3a7   : > { %3098 = vmatmul.mubr.msk.bf16.vlgmr.msra.gmra.mrb[0].mxu1 %vm1036_vm4, %v679_v46  ;;  %v682_v53 = vpack.i.b16 %v681_v49, %v680_v48  ;;  %v687_v56 = vshrl.u32 %v676_v54, 16  ;;  %v685_v57 = vpack.i.b16 %v676_v54, %v651_v55 }
 0x3a8   : > { %3108 = vmatpush3.bf16.xpose.msra.mxu1 %v1133_v52  ;;  %3109 = vmatprep.mubr.msk.bf16.mxu1 %vm3505_vm1, %v3504_v8 }
 0x3a9   : > { %3104 = vmatmul.mubr.msk.bf16.vlgmr.msra.gmra.mrb[4].mxu0 %vm1036_vm4, %v682_v53  ;;  %3119 = vmatprep.subr.bf16.mxu1 %v3504_v8  ;;  %v688_v59 = vpack.i.b16 %v687_v56, %v686_v58 }
 0x3aa   : > { %3114 = vmatpush3.bf16.xpose.msra.mxu0 %v1179_v33  ;;  %3115 = vmatprep.mubr.msk.bf16.mxu0 %vm3505_vm1, %v3504_v8 }
 0x3ab   : > { %3125 = vmatprep.subr.bf16.mxu0 %v3504_v8 }
 0x3af   : > { %3110 = vmatmul.mubr.msk.bf16.vlgmr.msra.gmra.mrb[4].mxu1 %vm1036_vm4, %v685_v57 }
 0x3b0   : > { %3121 = vmatprep.mubr.msk.bf16.mxu1 %vm3505_vm1, %v3504_v8 }
 0x3b1   : > { %3116 = vmatmul.mubr.msk.bf16.vlgmr.msra.gmra.mrb[8].mxu0 %vm1036_vm4, %v688_v59 }
 0x3b2   : > { %3127 = vmatprep.mubr.msk.bf16.mxu0 %vm3505_vm1, %v3504_v8 }
 0x47a   : > { %v1077_v62 = vpop.f32.mrb[0].mxu1 }
 0x47b   : > { %v1223_v63 = vsel %vm404_vm5, 1e-09, %v1077_v62  ;;  %v3099_v0 = vpop.f32.mrb[1].mxu1 }
 0x47c   : > { %v1080_v1 = vpop.f32.mrb[2].mxu1  ;;  %v1123_v2 = vpop.f32.mrb[4].mxu0  ;;  %v1227_v3 = vsel %vm1036_vm4, %v1223_v63, -inf }
 0x47d   : > { %v1224_v4 = vsel %vm404_vm5, 1e-09, %v1123_v2  ;;  %v3100_v5 = vpop.f32.mrb[3].mxu1  ;;  %v3105_v6 = vpop.f32.mrb[5].mxu0  ;;  %1228 = vmax.xlane.f32.xlu1 %v1227_v3 }
 0x47e   : > { %v1126_v10 = vpop.f32.mrb[6].mxu0  ;;  %v1230_v11 = vsel %vm1036_vm4, %v1224_v4, -inf }
 0x47f   : > { %v3106_v12 = vpop.f32.mrb[7].mxu0  ;;  %1231 = vmax.xlane.f32.xlu0 %v1230_v11 }
 0x482   : > { %v1169_v13 = vpop.f32.mrb[4].mxu1 }
 0x483   : > { %v1225_v14 = vsel %vm404_vm5, 1e-09, %v1169_v13  ;;  %v3111_v15 = vpop.f32.mrb[5].mxu1 }
 0x484   : > { %v1172_v16 = vpop.f32.mrb[6].mxu1  ;;  %v1215_v17 = vpop.f32.mrb[8].mxu0  ;;  %v1233_v18 = vsel %vm1036_vm4, %v1225_v14, -inf }
 0x485   : > { %v1226_v19 = vsel %vm404_vm5, 1e-09, %v1215_v17  ;;  %v3112_v20 = vpop.f32.mrb[7].mxu1  ;;  %v3117_v21 = vpop.f32.mrb[9].mxu0  ;;  %1234 = vmax.xlane.f32.xlu0 %v1233_v18 }
 0x486   : > { %v1218_v22 = vpop.f32.mrb[10].mxu0  ;;  %v1236_v23 = vsel %vm1036_vm4, %v1226_v19, -inf }
 0x487   : > { %v3118_v24 = vpop.f32.mrb[11].mxu0  ;;  %1237 = vmax.xlane.f32.xlu1 %v1236_v23 }
 0x498   : > { %868 = vrot.lane.b32.xlu1 %v3800_v34, %s3513_s28 }
 0x49b   : > { %866 = vrot.lane.b32.xlu0 %v3786_v31, %s3513_s28 }
 0x50a   : > { %v1229_v26 = vpop.xlane.xlu1 %1228 }
 0x50b   : > { %v1239_v27 = vsub.f32 %v1223_v63, %v1229_v26 }
 0x50c   : > { %v1232_v28 = vpop.xlane.xlu0 %1231 }
 0x50d   : > { %v1243_v29 = vmul.f32 1.442695, %v1239_v27  ;;  %v1240_v30 = vsub.f32 %v1224_v4, %v1232_v28 }
 0x50f   : > { %3305 = vpow2.f32 %v1243_v29  ;;  %v1245_v32 = vmul.f32 1.442695, %v1240_v30 }
 0x511   : > { %3307 = vpow2.f32 %v1245_v32 }
 0x512   : > { %v1235_v40 = vpop.xlane.xlu0 %1234 }
 0x513   : > { %v1241_v42 = vsub.f32 %v1225_v14, %v1235_v40 }
 0x514   : > { %v1238_v31 = vpop.xlane.xlu1 %1237 }
 0x515   : > { %v1242_v41 = vsub.f32 %v1226_v19, %v1238_v31  ;;  %v1247_v44 = vmul.f32 1.442695, %v1241_v42 }
 0x517   : > { %v1249_v43 = vmul.f32 1.442695, %v1242_v41 }
 0x518   : > { %v869_v49 = vpop.permute.xlu1 %868 }
 0x519   : > { %v3900_v37 = vpop.eup %3305  ;;  %3309 = vpow2.f32 %v1249_v43  ;;  %v915_v54 = vrot.slane %v869_v49, %v3816_v47 }
 0x51a   : > { %v1251_v38 = vsel %vm1036_vm4, %v3900_v37, 0.0  ;;  %3311 = vpow2.f32 %v1247_v44 }
 0x51b   : > { %v3904_v39 = vpop.eup %3307  ;;  %1252 = vadd.xlane.f32.xlu0 %v1251_v38 }
 0x51c   : > { %v1254_v34 = vsel %vm1036_vm4, %v3904_v39, 0.0 }
 0x51d   : > { %1255 = vadd.xlane.f32.xlu1 %v1254_v34 }
 0x523   : > { %v3912_v45 = vpop.eup %3309 }
 0x524   : > { %v3914_v46 = vpop.eup %3311  ;;  %v1260_v48 = vsel %vm1036_vm4, %v3912_v45, 0.0 }
 0x52e   : > { %870 = vrot.lane.b32.xlu1 %v3804_v35, %s3513_s28  ;;  %v1257_v35 = vsel %vm1036_vm4, %v3914_v46, 0.0 }
 0x531   : > { %872 = vrot.lane.b32.xlu0 %v3808_v36, %s3513_s28  ;;  %v867_v36 = vpop.permute.xlu0 %866 }
 0x532   : > { %v881_v56 = vrot.slane %v867_v36, %v3816_v47 }
 0x550   : > { %1261 = vadd.xlane.f32.xlu0 %v1260_v48 }
 0x552   : > { %1258 = vadd.xlane.f32.xlu1 %v1257_v35 }
 0x5a8   : > { %v1253_v51 = vpop.xlane.xlu0 %1252 }
 0x5a9   : > { %3313 = vrcp.f32 %v1253_v51 }
 0x5aa   : > { %v1256_v52 = vpop.xlane.xlu1 %1255 }
 0x5ab   : > { %3315 = vrcp.f32 %v1256_v52 }
 0x5ac   : > { %v873_v53 = vpop.permute.xlu0 %872 }
 0x5ad   : > { %v923_v33 = vrot.slane %v873_v53, %v3816_v47 }
 0x5ae   : > { %v871_v55 = vpop.permute.xlu1 %870 }
 0x5af   : > { %v924_v57 = vcombine.low %v915_v54, %v923_v33  ;;  %v925_v58 = vcombine.high %v915_v54, %v923_v33  ;;  %v889_v59 = vrot.slane %v871_v55, %v3816_v47 }
 0x5b1   : > { %v932_v62 = vrot.slane %v924_v57, %v3819_v50  ;;  %v939_v63 = vrot.slane %v925_v58, %v3819_v50  ;;  %v890_v0 = vcombine.low %v881_v56, %v889_v59  ;;  %v891_v1 = vcombine.high %v881_v56, %v889_v59 }
 0x5b3   : > { %v940_v2 = vcombine.high %v932_v62, %v3512_v60  ;;  %v941_v3 = vcombine.high %v939_v63, %v3512_v60  ;;  %v898_v4 = vrot.slane %v890_v0, %v3819_v50  ;;  %v905_v5 = vrot.slane %v891_v1, %v3819_v50  ;;  %v3314_v31 = vpop.eup %3313 }
 0x5b4   : > { %v947_v6 = vshrl.u32 %v932_v62, 16  ;;  %v963_v10 = vshrl.u32 %v939_v63, 16  ;;  %v1264_v49 = vmul.f32 %v3314_v31, %v3900_v37 }
 0x5b5   : > { %v955_v11 = vshrl.u32 %v940_v2, 16  ;;  %v906_v12 = vcombine.high %v898_v4, %v3512_v60  ;;  %v907_v13 = vcombine.high %v905_v5, %v3512_v60  ;;  %v944_v14 = vpack.i.b16 %v932_v62, %v898_v4  ;;  %v3316_v43 = vpop.eup %3315 }
 0x5b6   : > { %v971_v15 = vshrl.u32 %v941_v3, 16  ;;  %v946_v16 = vshrl.u32 %v898_v4, 16  ;;  %v960_v17 = vpack.i.b16 %v939_v63, %v905_v5  ;;  %v962_v18 = vshrl.u32 %v905_v5, 16 }
 0x5b7   : > { %v952_v19 = vpack.i.b16 %v940_v2, %v906_v12  ;;  %v954_v20 = vshrl.u32 %v906_v12, 16  ;;  %v968_v21 = vpack.i.b16 %v941_v3, %v907_v13  ;;  %v970_v22 = vshrl.u32 %v907_v13, 16 }
 0x5b8   : > { %v948_v23 = vpack.i.b16 %v947_v6, %v946_v16  ;;  %v964_v24 = vpack.i.b16 %v963_v10, %v962_v18  ;;  %v974_v26 = vcombine.low %v944_v14, %v960_v17  ;;  %v1266_v33 = vmul.f32 %v3316_v43, %v3904_v39  ;;  %v3972_v43 = vld [vmem:[#allocation7] sm:$0xff]  }
 0x5b9   : > { %v956_v27 = vpack.i.b16 %v955_v11, %v954_v20  ;;  %v972_v28 = vpack.i.b16 %v971_v15, %v970_v22  ;;  %v982_v29 = vcombine.low %v952_v19, %v968_v21  ;;  %v1271_v63 = vpack.c.bf16 %v1264_v49, %v1264_v49 }
 0x5ba   : > { %v999_v30 = vcombine.low %v948_v23, %v964_v24  ;;  %v981_v32 = vrot.slane %v974_v26, %v3816_v47  ;;  %v1272_v1 = vpack.c.bf16 %v1266_v33, %v1266_v33 }
 0x5bb   : > { %v1007_v38 = vcombine.low %v956_v27, %v972_v28  ;;  %v989_v34 = vrot.slane %v982_v29, %v3816_v47 }
 0x5bc   : > { %v1006_v41 = vrot.slane %v999_v30, %v3816_v47 }
 0x5bd   : > { %v990_v40 = vcombine.low %v981_v32, %v989_v34  ;;  %v1014_v42 = vrot.slane %v1007_v38, %v3816_v47 }
 0x5bf   : > { %v997_v44 = vrot.slane %v990_v40, %v3819_v50  ;;  %v1015_v48 = vcombine.low %v1006_v41, %v1014_v42 }
 0x5c1   : > { %v1022_v35 = vrot.slane %v1015_v48, %v3819_v50  ;;  %v998_v36 = vcombine.high %v997_v44, %v3512_v60  ;;  %v1027_v52 = vshrl.u32 %v997_v44, 16 }
 0x5c3   : > { %v1026_v51 = vpack.i.b16 %v1022_v35, %v997_v44  ;;  %v1028_v53 = vshrl.u32 %v1022_v35, 16  ;;  %v1023_v54 = vcombine.high %v1022_v35, %v3512_v60  ;;  %v1033_v55 = vshrl.u32 %v998_v36, 16 }
 0x5c5   : > { %v1280_v56 = vsel %vm1278_vm6, %v1026_v51, 0  ;;  %v1029_v57 = vpack.i.b16 %v1028_v53, %v1027_v52  ;;  %v1032_v58 = vpack.i.b16 %v1023_v54, %v998_v36  ;;  %v1034_v59 = vshrl.u32 %v1023_v54, 16  ;;  %v3980_v54 = vld [vmem:[#allocation7 + $0x8] sm:$0xff]  }
 0x5c6   : > { %3120 = vmatpush3.bf16.msra.mxu1 %v1280_v56 }
 0x5c7   : > { %v1326_v62 = vsel %vm1278_vm6, %v1029_v57, 0  ;;  %3131 = vmatprep.subr.bf16.mxu1 %v3504_v8  ;;  %v1035_v37 = vpack.i.b16 %v1034_v59, %v1033_v55  ;;  %v1372_v0 = vsel %vm1278_vm6, %v1032_v58, 0 }
 0x5c8   : > { %3126 = vmatpush3.bf16.msra.mxu0 %v1326_v62 }
 0x5c9   : > { %3122 = vmatmul.mubr.msk.bf16.vlgmr.msra.gmra.mrb[8].mxu1 %vm1036_vm4, %v1271_v63  ;;  %3137 = vmatprep.subr.bf16.mxu0 %v3504_v8  ;;  %v1418_v39 = vsel %vm1278_vm6, %v1035_v37, 0 }
 0x5ca   : > { %3132 = vmatpush3.bf16.msra.mxu1 %v1372_v0  ;;  %3133 = vmatprep.mubr.msk.bf16.mxu1 %vm3505_vm1, %v3504_v8 }
 0x5cb   : > { %3128 = vmatmul.mubr.msk.bf16.vlgmr.msra.gmra.mrb[12].mxu0 %vm1036_vm4, %v1272_v1  ;;  %3143 = vmatprep.subr.bf16.mxu1 %v3504_v8 }
 0x5cc   : > { %3138 = vmatpush3.bf16.msra.mxu0 %v1418_v39  ;;  %3139 = vmatprep.mubr.msk.bf16.mxu0 %vm3505_vm1, %v3504_v8 }
 0x5cd   : > { %3151 = vmatprep.subr.bf16.mxu0 %v3504_v8 }
 0x5dd   : > { %v1262_v2 = vpop.xlane.xlu0 %1261 }
 0x5de   : > { %3317 = vrcp.f32 %v1262_v2 }
 0x5df   : > { %v1259_v3 = vpop.xlane.xlu1 %1258 }
 0x5e0   : > { %3319 = vrcp.f32 %v1259_v3 }
 0x5e8   : > { %v3318_v4 = vpop.eup %3317 }
 0x5e9   : > { %v1270_v5 = vmul.f32 %v3318_v4, %v3912_v45 }
 0x5ea   : > { %v3320_v6 = vpop.eup %3319 }
 0x5eb   : > { %v1268_v10 = vmul.f32 %v3320_v6, %v3914_v46  ;;  %v1274_v11 = vpack.c.bf16 %v1270_v5, %v1270_v5 }
 0x5ed   : > { %3140 = vmatmul.mubr.msk.bf16.vlgmr.msra.gmra.mrb[16].mxu0 %vm1036_vm4, %v1274_v11  ;;  %v1273_v12 = vpack.c.bf16 %v1268_v10, %v1268_v10 }
 0x5ee   : > { %3152 = vmatpush3.bf16.msra.mxu0 %v3754_v7  ;;  %3155 = vmatprep.mubr.msk.bf16.mxu0 %vm3505_vm1, %v3504_v8 }
 0x5ef   : > { %3134 = vmatmul.mubr.msk.bf16.vlgmr.msra.gmra.mrb[12].mxu1 %vm1036_vm4, %v1273_v12  ;;  %3153 = vmatprep.subr.bf16.mxu0 %v3504_v8 }
 0x5f0   : > { %3147 = vmatprep.mubr.msk.bf16.mxu1 %vm3505_vm1, %v3504_v8  ;;  %3144 = vmatpush3.bf16.msra.mxu1 %v3972_v43 }
 0x5f1   : > { %3145 = vmatprep.subr.bf16.mxu1 %v3504_v8 }
 0x5f2   : > { %3154 = vmatpush3.bf16.msra.mxu0 %v3763_v9 }
 0x5f3   : > { %3165 = vmatprep.subr.bf16.mxu0 %v3504_v8 }
 0x5f4   : > { %3146 = vmatpush3.bf16.msra.mxu1 %v3980_v54 }
 0x5f5   : > { %3159 = vmatprep.subr.bf16.mxu1 %v3504_v8 }
 0x69c   : > { %v1316_v45 = vpop.f32.mrb[8].mxu1 }
 0x69d   : > { %v3123_v46 = vpop.f32.mrb[9].mxu1 }
 0x69e   : > { %v1319_v13 = vpop.f32.mrb[10].mxu1  ;;  %v1362_v14 = vpop.f32.mrb[12].mxu0 }
 0x69f   : > { %v3124_v15 = vpop.f32.mrb[11].mxu1  ;;  %v3129_v7 = vpop.f32.mrb[13].mxu0 }
 0x6a0   : > { %v1365_v16 = vpop.f32.mrb[14].mxu0 }
 0x6a1   : > { %v3130_v17 = vpop.f32.mrb[15].mxu0 }
 0x6c0   : > { %v1454_v18 = vpop.f32.mrb[16].mxu0 }
 0x6c1   : > { %v1476_v19 = vcombine.low %v1362_v14, %v1454_v18  ;;  %v1477_v20 = vcombine.high %v1362_v14, %v1454_v18  ;;  %v3141_v21 = vpop.f32.mrb[17].mxu0  ;;  %v4004_v14 = vld [vmem:[%s4268_s9] ss:$0 sm:$0xff] }
 0x6c2   : > { %v1408_v22 = vpop.f32.mrb[12].mxu1  ;;  %v1457_v23 = vpop.f32.mrb[18].mxu0 }
 0x6c3   : > { %v1460_v24 = vcombine.low %v1316_v45, %v1408_v22  ;;  %v1461_v26 = vcombine.high %v1316_v45, %v1408_v22  ;;  %v3135_v27 = vpop.f32.mrb[13].mxu1  ;;  %v3142_v9 = vpop.f32.mrb[19].mxu0  ;;  %v1484_v29 = vrot.slane %v1476_v19, %v3816_v47  ;;  %v1491_v30 = vrot.slane %v1477_v20, %v3816_v47 }
 0x6c4   : > { %v1411_v28 = vpop.f32.mrb[14].mxu1 }
 0x6c5   : > { %v1468_v32 = vrot.slane %v1460_v24, %v3816_v47  ;;  %v1475_v38 = vrot.slane %v1461_v26, %v3816_v47  ;;  %v3136_v34 = vpop.f32.mrb[15].mxu1 }
 0x6c7   : > { %v1492_v31 = vcombine.low %v1468_v32, %v1484_v29  ;;  %v1493_v40 = vcombine.high %v1468_v32, %v1484_v29  ;;  %v1508_v41 = vcombine.low %v1475_v38, %v1491_v30  ;;  %v1509_v42 = vcombine.high %v1475_v38, %v1491_v30 }
 0x6c9   : > { %v1500_v44 = vrot.slane %v1492_v31, %v3819_v50  ;;  %v1507_v48 = vrot.slane %v1493_v40, %v3819_v50  ;;  %v1516_v35 = vrot.slane %v1508_v41, %v3819_v50  ;;  %v1523_v36 = vrot.slane %v1509_v42, %v3819_v50  ;;  %v3025_v31 = vld [vmem:[%s4263_s4] ss:$0 sm:$0xff] }
 0x6ca   : > { %v3026_v41 = vld [vmem:[%s4264_s5] ss:$0 sm:$0xff] }
 0x6cb   : > { %v1528_v49 = vcombine.low %v1500_v44, %v1507_v48  ;;  %v3019_v51 = vcombine.high %v1500_v44, %v1507_v48  ;;  %v1544_v52 = vcombine.low %v1516_v35, %v1523_v36  ;;  %v3020_v53 = vcombine.high %v1516_v35, %v1523_v36 }
 0x6cd   : > { %v1535_v33 = vrot.slane %v1528_v49, %v3816_v47  ;;  %v1543_v55 = vrot.slane %v3019_v51, %v3816_v47  ;;  %v1551_v56 = vrot.slane %v1544_v52, %v3816_v47  ;;  %v1559_v57 = vrot.slane %v3020_v53, %v3816_v47 }
 0x6cf   : > { %v1561_v58 = vcombine.high %v1535_v33, %v1543_v55  ;;  %v1577_v59 = vcombine.high %v1551_v56, %v1559_v57  ;;  %v1560_v62 = vcombine.low %v1535_v33, %v1543_v55  ;;  %v1576_v63 = vcombine.low %v1551_v56, %v1559_v57 }
 0x6d1   : > { %v1575_v37 = vrot.slane %v1561_v58, %v3819_v50  ;;  %v1591_v0 = vrot.slane %v1577_v59, %v3819_v50  ;;  %v1568_v1 = vrot.slane %v1560_v62, %v3819_v50  ;;  %v1584_v39 = vrot.slane %v1576_v63, %v3819_v50 }
 0x6d3   : > { %v1594_v2 = vcombine.low %v1575_v37, %v1591_v0  ;;  %v1593_v3 = vcombine.high %v1568_v1, %v1584_v39  ;;  %v1595_v4 = vcombine.high %v1575_v37, %v1591_v0  ;;  %v1592_v5 = vcombine.low %v1568_v1, %v1584_v39 }
 0x6d5   : > { %1601 = vrot.lane.b32.xlu1 %v1594_v2, %s3514_s12  ;;  %1597 = vrot.lane.b32.xlu0 %v1593_v3, %s3515_s11 }
 0x6d9   : > { %1605 = vrot.lane.b32.xlu1 %v1595_v4, %s3516_s25 }
 0x747   : > { %v1602_v6 = vpop.permute.xlu1 %1601  ;;  %v1598_v10 = vpop.permute.xlu0 %1597 }
 0x748   : > { %v1608_v11 = vsel %vm1036_vm4, %v1592_v5, %v1598_v10 }
 0x749   : > { %v1610_v45 = vsel %vm1609_vm7, %v1608_v11, %v1602_v6 }
 0x74b   : > { %v1606_v12 = vpop.permute.xlu1 %1605 }
 0x74c   : > { %v1612_v46 = vsel %vm1611_vm8, %v1610_v45, %v1606_v12 }
 0x74d   : > { %v1613_v13 = vpack.c.bf16 %v1612_v46, %v1612_v46 }
 0x74f   : > { %3148 = vmatmul.mubr.msk.bf16.vlgmr.msra.gmra.mrb[16].mxu1 %vm418_vm0, %v1613_v13 }
 0x750   : > { %3161 = vmatprep.mubr.msk.bf16.mxu1 %vm3505_vm1, %v3504_v8 }
 0x822   : > { %v1669_v15 = vpop.f32.mrb[16].mxu1 }
 0x823   : > { %v1670_v7 = vadd.f32 %v4004_v14, %v1669_v15  ;;  %v3149_v16 = vpop.f32.mrb[17].mxu1 }
 0x824   : > { %v1672_v17 = vpop.f32.mrb[18].mxu1 }
 0x825   : > { %v3150_v18 = vpop.f32.mrb[19].mxu1  ;;  %v1677_v19 = vsel %vm418_vm0, %v1670_v7, 0.0 }
 0x826   : > { %1678 = vadd.xlane.f32.xlu0 %v1677_v19 }
 0x8b3   : > { %v1679_v20 = vpop.xlane.xlu0 %1678 }
 0x8b4   : > { %v1680_v21 = vmul.f32 0.03125, %v1679_v20 }
 0x8b6   : > { %v1681_v22 = vsub.f32 %v1670_v7, %v1680_v21 }
 0x8b8   : > { %v1682_v23 = vmul.f32 %v1681_v22, %v1681_v22 }
 0x8ba   : > { %v1683_v24 = vsel %vm418_vm0, %v1682_v23, 0.0 }
 0x8bb   : > { %1684 = vadd.xlane.f32.xlu1 %v1683_v24 }
 0x948   : > { %v1685_v26 = vpop.xlane.xlu1 %1684 }
 0x949   : > { %v1686_v27 = vmul.f32 0.032258064, %v1685_v26 }
 0x94b   : > { %3321 = vrsqrt.f32 %v1686_v27  ;;  %vm1689_vm9 = vcmp.eq.f32.partialorder %v1686_v27, inf  ;;  %v1692_v29 = vand.u32 2147483648, %v1686_v27  ;;  %vm1691_vm10 = vcmp.eq.f32.partialorder %v1686_v27, 0.0 }
 0x955   : > { %v3322_v9 = vpop.eup %3321 }
 0x956   : > { %v1688_v28 = vmul.f32 %v3322_v9, %v1686_v27 }
 0x958   : > { %v1690_v30 = vsel %vm1689_vm9, %v1686_v27, %v1688_v28 }
 0x959   : > { %v1693_v32 = vsel %vm1691_vm10, %v1692_v29, %v1690_v30 }
 0x95a   : > { %v1694_v38 = vadd.f32 1e-06, %v1693_v32 }
 0x95c   : > { %3323 = vrcp.f32 %v1694_v38 }
 0x966   : > { %v3324_v34 = vpop.eup %3323 }
 0x967   : > { %v1697_v40 = vmul.f32 %v3324_v34, %v1681_v22 }
 0x969   : > { %v1704_v42 = vmul.f32 %v3025_v31, %v1697_v40 }
 0x96b   : > { %v1711_v44 = vadd.f32 %v3026_v41, %v1704_v42 }
 0x96d   : > { %v1712_v48 = vpack.c.bf16 %v1711_v44, %v1711_v44 }
 0x96f   : > { %3156 = vmatmul.mubr.msk.bf16.vlgmr.msra.gmra.mrb[20].mxu0 %vm418_vm0, %v1712_v48 }
 0x970   : > { %3167 = vmatprep.mubr.msk.bf16.mxu0 %vm3505_vm1, %v3504_v8 }
 0xa42   : > { %v1750_v35 = vpop.f32.mrb[20].mxu0 }
 0xa43   : > { %v1751_v36 = vadd.f32 %v3783_v25, %v1750_v35  ;;  %v3157_v49 = vpop.f32.mrb[21].mxu0 }
 0xa44   : > { %v1753_v51 = vpop.f32.mrb[22].mxu0 }
 0xa45   : > { %v4019_v52 = vpack.c.bf16 %v1751_v36, %v1751_v36  ;;  %v3158_v53 = vpop.f32.mrb[23].mxu0  ;;  %v1756_v33 = vmul.f32 0.35355338, %v1751_v36 }
 0xa47   : > { %1930 = vrot.lane.b32.xlu1 %v4019_v52, %s3508_s19  ;;  %1928 = vrot.lane.b32.xlu0 %v4019_v52, %s3507_s1  ;;  %v1757_v56 = vpack.c.bf16 %v1756_v33, %v1756_v33 }
 0xa49   : > { %v1772_v15 = vrot.slane %v1757_v56, %v3816_v47 }
 0xa4b   : > { %1934 = vrot.lane.b32.xlu1 %v4019_v52, %s3509_s21  ;;  %1932 = vrot.lane.b32.xlu0 %v4019_v52, %s3506_s26 }
 0xab9   : > { %v4029_v55 = vpop.permute.xlu1 %1930  ;;  %v4031_v25 = vpop.permute.xlu0 %1928 }
 0xaba   : > { %1938 = vrot.lane.b32.xlu1 %v4029_v55, %s3509_s21  ;;  %1936 = vrot.lane.b32.xlu0 %v4031_v25, %s3509_s21 }
 0xabd   : > { %v4037_v57 = vpop.permute.xlu0 %1932  ;;  %v1935_v58 = vpop.permute.xlu1 %1934 }
 0xabe   : > { %1940 = vrot.lane.b32.xlu0 %v4037_v57, %s3509_s21  ;;  %1760 = vrot.lane.b32.xlu1 %v1757_v56, %s3507_s1  ;;  %v1949_v63 = vrot.slane %v1935_v58, %v3816_v47 }
 0xac2   : > { %1762 = vrot.lane.b32.xlu0 %v1757_v56, %s3508_s19  ;;  %1764 = vrot.lane.b32.xlu1 %v1757_v56, %s3506_s26  ;;  %s4289_s26 = sshll.u32 %s3735_s8, 3 }
 0xac3   : > { %s401_s1 = scalar_lea.vmem [#allocation8], %s4289_s26 }
 0xac4   : > { %s2904_s19 = sshll.u32 %s401_s1, 4  ;;  %s4216_s19 = int_to_ptr.vmem [resolvable:$true] %s2904_s19 }
 0xb2c   : > { %v1939_v59 = vpop.permute.xlu1 %1938  ;;  %v1937_v62 = vpop.permute.xlu0 %1936 }
 0xb2d   : > { %v1957_v37 = vrot.slane %v1939_v59, %v3816_v47  ;;  %v1983_v6 = vrot.slane %v1937_v62, %v3816_v47 }
 0xb2f   : > { %v1958_v0 = vcombine.low %v1949_v63, %v1957_v37  ;;  %v1959_v1 = vcombine.high %v1949_v63, %v1957_v37 }
 0xb30   : > { %v1941_v39 = vpop.permute.xlu0 %1940  ;;  %v1761_v2 = vpop.permute.xlu1 %1760 }
 0xb31   : > { %v1966_v3 = vrot.slane %v1958_v0, %v3819_v50  ;;  %v1973_v4 = vrot.slane %v1959_v1, %v3819_v50  ;;  %v1991_v5 = vrot.slane %v1941_v39, %v3816_v47  ;;  %v1806_v46 = vrot.slane %v1761_v2, %v3816_v47 }
 0xb33   : > { %v1974_v10 = vcombine.high %v1966_v3, %v3512_v60  ;;  %v1975_v11 = vcombine.high %v1973_v4, %v3512_v60  ;;  %v1992_v12 = vcombine.low %v1983_v6, %v1991_v5  ;;  %v1993_v45 = vcombine.high %v1983_v6, %v1991_v5 }
 0xb34   : > { %v1763_v13 = vpop.permute.xlu0 %1762  ;;  %v1765_v7 = vpop.permute.xlu1 %1764  ;;  %v2014_v16 = vshrl.u32 %v1966_v3, 16  ;;  %v2030_v17 = vshrl.u32 %v1973_v4, 16 }
 0xb35   : > { %v1780_v18 = vrot.slane %v1763_v13, %v3816_v47  ;;  %v1814_v19 = vrot.slane %v1765_v7, %v3816_v47  ;;  %v2022_v20 = vshrl.u32 %v1974_v10, 16  ;;  %v2038_v21 = vshrl.u32 %v1975_v11, 16 }
 0xb36   : > { %v2000_v22 = vrot.slane %v1992_v12, %v3819_v50  ;;  %v2007_v23 = vrot.slane %v1993_v45, %v3819_v50 }
 0xb37   : > { %v1781_v24 = vcombine.low %v1772_v15, %v1780_v18  ;;  %v1782_v26 = vcombine.high %v1772_v15, %v1780_v18  ;;  %v1815_v27 = vcombine.low %v1806_v46, %v1814_v19  ;;  %v1816_v9 = vcombine.high %v1806_v46, %v1814_v19 }
 0xb38   : > { %v2008_v28 = vcombine.high %v2000_v22, %v3512_v60  ;;  %v2009_v29 = vcombine.high %v2007_v23, %v3512_v60  ;;  %v2012_v30 = vpack.i.b16 %v2000_v22, %v1966_v3  ;;  %v2015_v32 = vshrl.u32 %v2000_v22, 16 }
 0xb39   : > { %v2028_v38 = vpack.i.b16 %v2007_v23, %v1973_v4  ;;  %v2031_v34 = vshrl.u32 %v2007_v23, 16  ;;  %v1789_v31 = vrot.slane %v1781_v24, %v3819_v50  ;;  %v1796_v40 = vrot.slane %v1782_v26, %v3819_v50 }
 0xb3a   : > { %v2016_v41 = vpack.i.b16 %v2015_v32, %v2014_v16  ;;  %v2020_v42 = vpack.i.b16 %v2008_v28, %v1974_v10  ;;  %v2023_v44 = vshrl.u32 %v2008_v28, 16  ;;  %v2036_v48 = vpack.i.b16 %v2009_v29, %v1975_v11 }
 0xb3b   : > { %v2032_v35 = vpack.i.b16 %v2031_v34, %v2030_v17  ;;  %v2039_v36 = vshrl.u32 %v2009_v29, 16  ;;  %v2042_v49 = vcombine.low %v2012_v30, %v2028_v38  ;;  %v1797_v51 = vcombine.high %v1789_v31, %v3512_v60 }
 0xb3c   : > { %v2024_v53 = vpack.i.b16 %v2023_v44, %v2022_v20  ;;  %v2050_v33 = vcombine.low %v2020_v42, %v2036_v48  ;;  %v1798_v56 = vcombine.high %v1796_v40, %v3512_v60  ;;  %v1837_v63 = vshrl.u32 %v1789_v31, 16 }
 0xb3d   : > { %v2040_v58 = vpack.i.b16 %v2039_v36, %v2038_v21  ;;  %v2049_v59 = vrot.slane %v2042_v49, %v3816_v47  ;;  %v2067_v62 = vcombine.low %v2016_v41, %v2032_v35  ;;  %v1845_v37 = vshrl.u32 %v1797_v51, 16 }
 0xb3e   : > { %v1853_v0 = vshrl.u32 %v1796_v40, 16  ;;  %v1823_v1 = vrot.slane %v1815_v27, %v3819_v50  ;;  %v1830_v39 = vrot.slane %v1816_v9, %v3819_v50  ;;  %v1861_v3 = vshrl.u32 %v1798_v56, 16 }
 0xb3f   : > { %v2075_v2 = vcombine.low %v2024_v53, %v2040_v58  ;;  %v2057_v4 = vrot.slane %v2050_v33, %v3816_v47  ;;  %v2074_v5 = vrot.slane %v2067_v62, %v3816_v47 }
 0xb40   : > { %v1831_v6 = vcombine.high %v1823_v1, %v3512_v60  ;;  %v1832_v10 = vcombine.high %v1830_v39, %v3512_v60  ;;  %v1835_v11 = vpack.i.b16 %v1823_v1, %v1789_v31  ;;  %v1838_v12 = vshrl.u32 %v1823_v1, 16 }
 0xb41   : > { %v1851_v45 = vpack.i.b16 %v1830_v39, %v1796_v40  ;;  %v1854_v46 = vshrl.u32 %v1830_v39, 16  ;;  %v2058_v13 = vcombine.low %v2049_v59, %v2057_v4  ;;  %v2082_v15 = vrot.slane %v2075_v2, %v3816_v47 }
 0xb42   : > { %v1839_v7 = vpack.i.b16 %v1838_v12, %v1837_v63  ;;  %v1843_v16 = vpack.i.b16 %v1831_v6, %v1797_v51  ;;  %v1846_v17 = vshrl.u32 %v1831_v6, 16  ;;  %v1859_v18 = vpack.i.b16 %v1832_v10, %v1798_v56 }
 0xb43   : > { %v1855_v19 = vpack.i.b16 %v1854_v46, %v1853_v0  ;;  %v1862_v20 = vshrl.u32 %v1832_v10, 16  ;;  %v1865_v21 = vcombine.low %v1835_v11, %v1851_v45  ;;  %v2065_v22 = vrot.slane %v2058_v13, %v3819_v50 }
 0xb44   : > { %v1847_v23 = vpack.i.b16 %v1846_v17, %v1845_v37  ;;  %v1873_v24 = vcombine.low %v1843_v16, %v1859_v18  ;;  %v2083_v26 = vcombine.low %v2074_v5, %v2082_v15 }
 0xb45   : > { %v1863_v27 = vpack.i.b16 %v1862_v20, %v1861_v3  ;;  %v1890_v9 = vcombine.low %v1839_v7, %v1855_v19  ;;  %v1872_v28 = vrot.slane %v1865_v21, %v3816_v47  ;;  %v2095_v38 = vshrl.u32 %v2065_v22, 16 }
 0xb46   : > { %v1880_v29 = vrot.slane %v1873_v24, %v3816_v47  ;;  %v2090_v30 = vrot.slane %v2083_v26, %v3819_v50  ;;  %v2066_v36 = vcombine.high %v2065_v22, %v3512_v60 }
 0xb47   : > { %v1898_v32 = vcombine.low %v1847_v23, %v1863_v27  ;;  %v1897_v42 = vrot.slane %v1890_v9, %v3816_v47 }
 0xb48   : > { %v1881_v34 = vcombine.low %v1872_v28, %v1880_v29  ;;  %v2094_v31 = vpack.i.b16 %v2090_v30, %v2065_v22  ;;  %v2096_v40 = vshrl.u32 %v2090_v30, 16  ;;  %v2091_v41 = vcombine.high %v2090_v30, %v3512_v60 }
 0xb49   : > { %v1905_v44 = vrot.slane %v1898_v32, %v3816_v47  ;;  %v2101_v59 = vshrl.u32 %v2066_v36, 16 }
 0xb4a   : > { %v2278_v48 = vsel %vm1036_vm4, %v2094_v31, 0  ;;  %v2097_v35 = vpack.i.b16 %v2096_v40, %v2095_v38  ;;  %v1888_v53 = vrot.slane %v1881_v34, %v3819_v50  ;;  %v2102_v33 = vshrl.u32 %v2091_v41, 16 }
 0xb4b   : > { %v1906_v49 = vcombine.low %v1897_v42, %v1905_v44  ;;  %3160 = vmatpush3.bf16.xpose.msra.mxu1 %v2278_v48  ;;  %v2100_v58 = vpack.i.b16 %v2091_v41, %v2066_v36 }
 0xb4c   : > { %v2324_v51 = vsel %vm1036_vm4, %v2097_v35, 0  ;;  %3171 = vmatprep.subr.bf16.mxu1 %v3504_v8  ;;  %v1918_v37 = vshrl.u32 %v1888_v53, 16  ;;  %v2103_v0 = vpack.i.b16 %v2102_v33, %v2101_v59  ;;  %v1889_v4 = vcombine.high %v1888_v53, %v3512_v60 }
 0xb4d   : > { %3166 = vmatpush3.bf16.xpose.msra.mxu0 %v2324_v51  ;;  %v1913_v56 = vrot.slane %v1906_v49, %v3819_v50  ;;  %v2370_v1 = vsel %vm1036_vm4, %v2100_v58, 0 }
 0xb4e   : > { %3177 = vmatprep.subr.bf16.mxu0 %v3504_v8  ;;  %v2416_v3 = vsel %vm1036_vm4, %v2103_v0, 0  ;;  %v1924_v10 = vshrl.u32 %v1889_v4, 16 }
 0xb4f   : > { %v1919_v62 = vshrl.u32 %v1913_v56, 16  ;;  %v1917_v63 = vpack.i.b16 %v1913_v56, %v1888_v53  ;;  %v1914_v2 = vcombine.high %v1913_v56, %v3512_v60 }
 0xb51   : > { %v1920_v39 = vpack.i.b16 %v1919_v62, %v1918_v37  ;;  %v1925_v5 = vshrl.u32 %v1914_v2, 16  ;;  %v1923_v6 = vpack.i.b16 %v1914_v2, %v1889_v4 }
 0xb52   : > { %3162 = vmatmul.mubr.msk.bf16.vlgmr.msra.gmra.mrb[20].mxu1 %vm1036_vm4, %v1917_v63 }
 0xb53   : > { %3172 = vmatpush3.bf16.xpose.msra.mxu1 %v2370_v1  ;;  %3173 = vmatprep.mubr.msk.bf16.mxu1 %vm3505_vm1, %v3504_v8  ;;  %v1926_v11 = vpack.i.b16 %v1925_v5, %v1924_v10 }
 0xb54   : > { %3168 = vmatmul.mubr.msk.bf16.vlgmr.msra.gmra.mrb[24].mxu0 %vm1036_vm4, %v1920_v39  ;;  %3183 = vmatprep.subr.bf16.mxu1 %v3504_v8 }
 0xb55   : > { %3178 = vmatpush3.bf16.xpose.msra.mxu0 %v2416_v3  ;;  %3179 = vmatprep.mubr.msk.bf16.mxu0 %vm3505_vm1, %v3504_v8 }
 0xb56   : > { %3189 = vmatprep.subr.bf16.mxu0 %v3504_v8 }
 0xb5a   : > { %3174 = vmatmul.mubr.msk.bf16.vlgmr.msra.gmra.mrb[24].mxu1 %vm1036_vm4, %v1923_v6 }
 0xb5b   : > { %3185 = vmatprep.mubr.msk.bf16.mxu1 %vm3505_vm1, %v3504_v8 }
 0xb5c   : > { %3180 = vmatmul.mubr.msk.bf16.vlgmr.msra.gmra.mrb[28].mxu0 %vm1036_vm4, %v1926_v11 }
 0xb5d   : > { %3191 = vmatprep.mubr.msk.bf16.mxu0 %vm3505_vm1, %v3504_v8 }
 0xc25   : > { %v2314_v12 = vpop.f32.mrb[20].mxu1 }
 0xc26   : > { %v2458_v45 = vsel %vm404_vm5, 1e-09, %v2314_v12  ;;  %v3163_v46 = vpop.f32.mrb[21].mxu1 }
 0xc27   : > { %v2317_v13 = vpop.f32.mrb[22].mxu1  ;;  %v2360_v15 = vpop.f32.mrb[24].mxu0  ;;  %v2462_v7 = vsel %vm1036_vm4, %v2458_v45, -inf }
 0xc28   : > { %v2459_v16 = vsel %vm404_vm5, 1e-09, %v2360_v15  ;;  %v3169_v17 = vpop.f32.mrb[25].mxu0  ;;  %2463 = vmax.xlane.f32.xlu0 %v2462_v7  ;;  %v3164_v18 = vpop.f32.mrb[23].mxu1 }
 0xc29   : > { %v2363_v19 = vpop.f32.mrb[26].mxu0  ;;  %v2465_v20 = vsel %vm1036_vm4, %v2459_v16, -inf }
 0xc2a   : > { %2466 = vmax.xlane.f32.xlu1 %v2465_v20  ;;  %v3170_v21 = vpop.f32.mrb[27].mxu0 }
 0xc2d   : > { %v2406_v22 = vpop.f32.mrb[24].mxu1 }
 0xc2e   : > { %v2460_v23 = vsel %vm404_vm5, 1e-09, %v2406_v22  ;;  %v3175_v24 = vpop.f32.mrb[25].mxu1 }
 0xc2f   : > { %v2409_v26 = vpop.f32.mrb[26].mxu1  ;;  %v2452_v27 = vpop.f32.mrb[28].mxu0  ;;  %v2468_v9 = vsel %vm1036_vm4, %v2460_v23, -inf }
 0xc30   : > { %v2461_v28 = vsel %vm404_vm5, 1e-09, %v2452_v27  ;;  %v3181_v29 = vpop.f32.mrb[29].mxu0  ;;  %2469 = vmax.xlane.f32.xlu0 %v2468_v9  ;;  %v3176_v30 = vpop.f32.mrb[27].mxu1 }
 0xc31   : > { %v2455_v32 = vpop.f32.mrb[30].mxu0  ;;  %v2471_v34 = vsel %vm1036_vm4, %v2461_v28, -inf }
 0xc32   : > { %v3182_v38 = vpop.f32.mrb[31].mxu0 }
 0xc34   : > { %2472 = vmax.xlane.f32.xlu0 %v2471_v34 }
 0xc3b   : > { %2104 = vrot.lane.b32.xlu1 %v4019_v52, %s3513_s28 }
 0xcb5   : > { %v2464_v31 = vpop.xlane.xlu0 %2463 }
 0xcb6   : > { %v2474_v40 = vsub.f32 %v2458_v45, %v2464_v31 }
 0xcb7   : > { %v2467_v41 = vpop.xlane.xlu1 %2466 }
 0xcb8   : > { %v2478_v42 = vmul.f32 1.442695, %v2474_v40  ;;  %v2475_v44 = vsub.f32 %v2459_v16, %v2467_v41 }
 0xcba   : > { %3325 = vpow2.f32 %v2478_v42  ;;  %v2480_v48 = vmul.f32 1.442695, %v2475_v44 }
 0xcbc   : > { %3327 = vpow2.f32 %v2480_v48 }
 0xcbd   : > { %v2470_v52 = vpop.xlane.xlu0 %2469 }
 0xcbe   : > { %v2476_v53 = vsub.f32 %v2460_v23, %v2470_v52 }
 0xcc0   : > { %v2482_v56 = vmul.f32 1.442695, %v2476_v53 }
 0xcc1   : > { %v2473_v51 = vpop.xlane.xlu0 %2472 }
 0xcc2   : > { %v2477_v33 = vsub.f32 %v2461_v28, %v2473_v51  ;;  %3329 = vpow2.f32 %v2482_v56 }
 0xcc4   : > { %v4118_v61 = vpop.eup %3325  ;;  %v2484_v58 = vmul.f32 1.442695, %v2477_v33 }
 0xcc5   : > { %v2486_v35 = vsel %vm1036_vm4, %v4118_v61, 0.0 }
 0xcc6   : > { %v4122_v36 = vpop.eup %3327  ;;  %2487 = vadd.xlane.f32.xlu1 %v2486_v35  ;;  %3331 = vpow2.f32 %v2484_v58 }
 0xcc7   : > { %v2489_v49 = vsel %vm1036_vm4, %v4122_v36, 0.0 }
 0xcc8   : > { %2490 = vadd.xlane.f32.xlu0 %v2489_v49 }
 0xccc   : > { %v4132_v59 = vpop.eup %3329 }
 0xcd0   : > { %v4134_v62 = vpop.eup %3331 }
 0xcd7   : > { %2108 = vrot.lane.b32.xlu1 %v4029_v55, %s3513_s28  ;;  %v2492_v55 = vsel %vm1036_vm4, %v4132_v59, 0.0 }
 0xcdb   : > { %2110 = vrot.lane.b32.xlu1 %v4037_v57, %s3513_s28  ;;  %v2495_v57 = vsel %vm1036_vm4, %v4134_v62, 0.0 }
 0xcde   : > { %2106 = vrot.lane.b32.xlu0 %v4031_v25, %s3513_s28  ;;  %v2105_v25 = vpop.permute.xlu1 %2104 }
 0xcdf   : > { %v2119_v1 = vrot.slane %v2105_v25, %v3816_v47 }
 0xcfd   : > { %2493 = vadd.xlane.f32.xlu0 %v2492_v55 }
 0xcff   : > { %2496 = vadd.xlane.f32.xlu1 %v2495_v57 }
 0xd53   : > { %v2488_v63 = vpop.xlane.xlu1 %2487 }
 0xd54   : > { %3333 = vrcp.f32 %v2488_v63 }
 0xd55   : > { %v2491_v37 = vpop.xlane.xlu0 %2490 }
 0xd56   : > { %3335 = vrcp.f32 %v2491_v37 }
 0xd57   : > { %v2109_v0 = vpop.permute.xlu1 %2108 }
 0xd58   : > { %v2127_v39 = vrot.slane %v2109_v0, %v3816_v47 }
 0xd59   : > { %v2107_v4 = vpop.permute.xlu0 %2106 }
 0xd5a   : > { %v2128_v2 = vcombine.low %v2119_v1, %v2127_v39  ;;  %v2129_v3 = vcombine.high %v2119_v1, %v2127_v39  ;;  %v2153_v11 = vrot.slane %v2107_v4, %v3816_v47 }
 0xd5b   : > { %v2111_v5 = vpop.permute.xlu1 %2110 }
 0xd5c   : > { %v2136_v6 = vrot.slane %v2128_v2, %v3819_v50  ;;  %v2161_v10 = vrot.slane %v2111_v5, %v3816_v47  ;;  %v2143_v12 = vrot.slane %v2129_v3, %v3819_v50 }
 0xd5e   : > { %v2162_v45 = vcombine.low %v2153_v11, %v2161_v10  ;;  %v2163_v46 = vcombine.high %v2153_v11, %v2161_v10  ;;  %v2144_v13 = vcombine.high %v2136_v6, %v3512_v60  ;;  %v2145_v16 = vcombine.high %v2143_v12, %v3512_v60  ;;  %v3334_v49 = vpop.eup %3333 }
 0xd5f   : > { %v2184_v17 = vshrl.u32 %v2136_v6, 16  ;;  %v2200_v23 = vshrl.u32 %v2143_v12, 16  ;;  %v2499_v25 = vmul.f32 %v3334_v49, %v4118_v61 }
 0xd60   : > { %v2170_v15 = vrot.slane %v2162_v45, %v3819_v50  ;;  %v2177_v7 = vrot.slane %v2163_v46, %v3819_v50  ;;  %v2192_v22 = vshrl.u32 %v2144_v13, 16  ;;  %v2208_v30 = vshrl.u32 %v2145_v16, 16  ;;  %v3336_v51 = vpop.eup %3335 }
 0xd61   : > { %v2501_v39 = vmul.f32 %v3336_v51, %v4122_v36  ;;  %v2506_v11 = vpack.c.bf16 %v2499_v25, %v2499_v25 }
 0xd62   : > { %v2178_v18 = vcombine.high %v2170_v15, %v3512_v60  ;;  %v2179_v19 = vcombine.high %v2177_v7, %v3512_v60  ;;  %v2182_v20 = vpack.i.b16 %v2170_v15, %v2136_v6  ;;  %v2185_v21 = vshrl.u32 %v2170_v15, 16 }
 0xd63   : > { %v2198_v24 = vpack.i.b16 %v2177_v7, %v2143_v12  ;;  %v2201_v26 = vshrl.u32 %v2177_v7, 16  ;;  %v2507_v12 = vpack.c.bf16 %v2501_v39, %v2501_v39 }
 0xd64   : > { %v2186_v27 = vpack.i.b16 %v2185_v21, %v2184_v17  ;;  %v2190_v9 = vpack.i.b16 %v2178_v18, %v2144_v13  ;;  %v2193_v28 = vshrl.u32 %v2178_v18, 16  ;;  %v2206_v29 = vpack.i.b16 %v2179_v19, %v2145_v16 }
 0xd65   : > { %v2202_v32 = vpack.i.b16 %v2201_v26, %v2200_v23  ;;  %v2209_v38 = vshrl.u32 %v2179_v19, 16  ;;  %v2212_v34 = vcombine.low %v2182_v20, %v2198_v24 }
 0xd66   : > { %v2194_v31 = vpack.i.b16 %v2193_v28, %v2192_v22  ;;  %v2220_v40 = vcombine.low %v2190_v9, %v2206_v29 }
 0xd67   : > { %v2210_v41 = vpack.i.b16 %v2209_v38, %v2208_v30  ;;  %v2237_v42 = vcombine.low %v2186_v27, %v2202_v32  ;;  %v2219_v44 = vrot.slane %v2212_v34, %v3816_v47 }
 0xd68   : > { %v2227_v48 = vrot.slane %v2220_v40, %v3816_v47 }
 0xd69   : > { %v2245_v35 = vcombine.low %v2194_v31, %v2210_v41  ;;  %v2244_v53 = vrot.slane %v2237_v42, %v3816_v47 }
 0xd6a   : > { %v2228_v52 = vcombine.low %v2219_v44, %v2227_v48 }
 0xd6b   : > { %v2252_v33 = vrot.slane %v2245_v35, %v3816_v47 }
 0xd6c   : > { %v2235_v56 = vrot.slane %v2228_v52, %v3819_v50 }
 0xd6d   : > { %v2253_v58 = vcombine.low %v2244_v53, %v2252_v33 }
 0xd6e   : > { %v2236_v55 = vcombine.high %v2235_v56, %v3512_v60  ;;  %v2265_v37 = vshrl.u32 %v2235_v56, 16 }
 0xd6f   : > { %v2260_v57 = vrot.slane %v2253_v58, %v3819_v50 }
 0xd70   : > { %v2271_v2 = vshrl.u32 %v2236_v55, 16 }
 0xd71   : > { %v2264_v63 = vpack.i.b16 %v2260_v57, %v2235_v56  ;;  %v2266_v0 = vshrl.u32 %v2260_v57, 16  ;;  %v2261_v1 = vcombine.high %v2260_v57, %v3512_v60 }
 0xd73   : > { %v2514_v3 = vsel %vm1278_vm6, %v2264_v63, 0  ;;  %v2267_v4 = vpack.i.b16 %v2266_v0, %v2265_v37  ;;  %v2270_v5 = vpack.i.b16 %v2261_v1, %v2236_v55  ;;  %v2272_v6 = vshrl.u32 %v2261_v1, 16 }
 0xd74   : > { %3184 = vmatpush3.bf16.msra.mxu1 %v2514_v3 }
 0xd75   : > { %v2560_v10 = vsel %vm1278_vm6, %v2267_v4, 0  ;;  %3195 = vmatprep.subr.bf16.mxu1 %v3504_v8  ;;  %v2273_v61 = vpack.i.b16 %v2272_v6, %v2271_v2  ;;  %v2606_v60 = vsel %vm1278_vm6, %v2270_v5, 0 }
 0xd76   : > { %3190 = vmatpush3.bf16.msra.mxu0 %v2560_v10 }
 0xd77   : > { %3186 = vmatmul.mubr.msk.bf16.vlgmr.msra.gmra.mrb[28].mxu1 %vm1036_vm4, %v2506_v11  ;;  %3201 = vmatprep.subr.bf16.mxu0 %v3504_v8  ;;  %v2652_v36 = vsel %vm1278_vm6, %v2273_v61, 0 }
 0xd78   : > { %3196 = vmatpush3.bf16.msra.mxu1 %v2606_v60  ;;  %3197 = vmatprep.mubr.msk.bf16.mxu1 %vm3505_vm1, %v3504_v8 }
 0xd79   : > { %3192 = vmatmul.mubr.msk.bf16.vlgmr.msra.gmra.mrb[32].mxu0 %vm1036_vm4, %v2507_v12  ;;  %3207 = vmatprep.subr.bf16.mxu1 %v3504_v8 }
 0xd7a   : > { %3202 = vmatpush3.bf16.msra.mxu0 %v2652_v36  ;;  %3203 = vmatprep.mubr.msk.bf16.mxu0 %vm3505_vm1, %v3504_v8 }
 0xd8a   : > { %v2494_v45 = vpop.xlane.xlu0 %2493 }
 0xd8b   : > { %3337 = vrcp.f32 %v2494_v45 }
 0xd8c   : > { %v2497_v46 = vpop.xlane.xlu1 %2496 }
 0xd8d   : > { %3339 = vrcp.f32 %v2497_v46 }
 0xd95   : > { %v3338_v13 = vpop.eup %3337 }
 0xd96   : > { %v2503_v15 = vmul.f32 %v3338_v13, %v4132_v59 }
 0xd97   : > { %v3340_v7 = vpop.eup %3339 }
 0xd98   : > { %v2505_v16 = vmul.f32 %v3340_v7, %v4134_v62  ;;  %v2508_v17 = vpack.c.bf16 %v2503_v15, %v2503_v15 }
 0xd9a   : > { %3198 = vmatmul.mubr.msk.bf16.vlgmr.msra.gmra.mrb[32].mxu1 %vm1036_vm4, %v2508_v17  ;;  %v2509_v18 = vpack.c.bf16 %v2505_v16, %v2505_v16 }
 0xd9b   : > { %3208 = vmatpush3.bf16.msra.mxu1 %v3972_v43  ;;  %3211 = vmatprep.mubr.msk.bf16.mxu1 %vm3505_vm1, %v3504_v8 }
 0xd9c   : > { %3204 = vmatmul.mubr.msk.bf16.vlgmr.msra.gmra.mrb[36].mxu0 %vm1036_vm4, %v2509_v18  ;;  %3209 = vmatprep.subr.bf16.mxu1 %v3504_v8 }
 0xd9f   : > { %3210 = vmatpush3.bf16.msra.mxu1 %v3980_v54 }
 0xe4a   : > { %v2550_v19 = vpop.f32.mrb[28].mxu1 }
 0xe4b   : > { %v3187_v59 = vpop.f32.mrb[29].mxu1 }
 0xe4c   : > { %v2553_v20 = vpop.f32.mrb[30].mxu1  ;;  %v2596_v21 = vpop.f32.mrb[32].mxu0 }
 0xe4d   : > { %v3188_v62 = vpop.f32.mrb[31].mxu1  ;;  %v3193_v22 = vpop.f32.mrb[33].mxu0 }
 0xe4e   : > { %v2599_v23 = vpop.f32.mrb[34].mxu0 }
 0xe4f   : > { %v3194_v24 = vpop.f32.mrb[35].mxu0 }
 0xe6d   : > { %v2642_v26 = vpop.f32.mrb[32].mxu1 }
 0xe6e   : > { %v2694_v27 = vcombine.low %v2550_v19, %v2642_v26  ;;  %v2695_v43 = vcombine.high %v2550_v19, %v2642_v26  ;;  %v3199_v9 = vpop.f32.mrb[33].mxu1 }
 0xe6f   : > { %v2645_v28 = vpop.f32.mrb[34].mxu1  ;;  %v2688_v29 = vpop.f32.mrb[36].mxu0 }
 0xe70   : > { %v2710_v30 = vcombine.low %v2596_v21, %v2688_v29  ;;  %v2711_v32 = vcombine.high %v2596_v21, %v2688_v29  ;;  %v3200_v38 = vpop.f32.mrb[35].mxu1  ;;  %v3205_v8 = vpop.f32.mrb[37].mxu0  ;;  %v2702_v54 = vrot.slane %v2694_v27, %v3816_v47  ;;  %v2709_v31 = vrot.slane %v2695_v43, %v3816_v47 }
 0xe71   : > { %v2691_v34 = vpop.f32.mrb[38].mxu0 }
 0xe72   : > { %v2718_v40 = vrot.slane %v2710_v30, %v3816_v47  ;;  %v2725_v41 = vrot.slane %v2711_v32, %v3816_v47  ;;  %v3206_v42 = vpop.f32.mrb[39].mxu0 }
 0xe74   : > { %v2726_v44 = vcombine.low %v2702_v54, %v2718_v40  ;;  %v2727_v48 = vcombine.high %v2702_v54, %v2718_v40  ;;  %v2742_v35 = vcombine.low %v2709_v31, %v2725_v41  ;;  %v2743_v49 = vcombine.high %v2709_v31, %v2725_v41 }
 0xe76   : > { %v2734_v52 = vrot.slane %v2726_v44, %v3819_v50  ;;  %v2741_v51 = vrot.slane %v2727_v48, %v3819_v50  ;;  %v2750_v53 = vrot.slane %v2742_v35, %v3819_v50  ;;  %v2757_v33 = vrot.slane %v2743_v49, %v3819_v50 }
 0xe78   : > { %v2762_v56 = vcombine.low %v2734_v52, %v2741_v51  ;;  %v3036_v58 = vcombine.high %v2734_v52, %v2741_v51  ;;  %v2778_v55 = vcombine.low %v2750_v53, %v2757_v33  ;;  %v3037_v57 = vcombine.high %v2750_v53, %v2757_v33 }
 0xe7a   : > { %v2769_v25 = vrot.slane %v2762_v56, %v3816_v47  ;;  %v2777_v63 = vrot.slane %v3036_v58, %v3816_v47  ;;  %v2785_v37 = vrot.slane %v2778_v55, %v3816_v47  ;;  %v2793_v0 = vrot.slane %v3037_v57, %v3816_v47 }
 0xe7c   : > { %v2795_v1 = vcombine.high %v2769_v25, %v2777_v63  ;;  %v2811_v39 = vcombine.high %v2785_v37, %v2793_v0  ;;  %v2794_v2 = vcombine.low %v2769_v25, %v2777_v63  ;;  %v2810_v3 = vcombine.low %v2785_v37, %v2793_v0 }
 0xe7e   : > { %v2809_v4 = vrot.slane %v2795_v1, %v3819_v50  ;;  %v2825_v5 = vrot.slane %v2811_v39, %v3819_v50  ;;  %v2802_v6 = vrot.slane %v2794_v2, %v3819_v50  ;;  %v2818_v10 = vrot.slane %v2810_v3, %v3819_v50 }
 0xe80   : > { %v2828_v11 = vcombine.low %v2809_v4, %v2825_v5  ;;  %v2827_v61 = vcombine.high %v2802_v6, %v2818_v10  ;;  %v2829_v60 = vcombine.high %v2809_v4, %v2825_v5  ;;  %v2826_v12 = vcombine.low %v2802_v6, %v2818_v10 }
 0xe82   : > { %2835 = vrot.lane.b32.xlu1 %v2828_v11, %s3514_s12  ;;  %2831 = vrot.lane.b32.xlu0 %v2827_v61, %s3515_s11  ;;  %s4214_s12 = scalar_lea.hbm %s4269_s10, %s3040_s24  ;;  %s3427_s11 = scalar_lea.vmem %s4216_s19, 128 }
 0xe83   : > { %p3428_p2 = scmp.ne.s32.totalorder %s4216_s19, %s3427_s11 }
 0xe85   : > { %p3429_p1 = pnand %p3428_p2, %p3686_p4 }
 0xe86   : > { %2839 = vrot.lane.b32.xlu0 %v2829_v60, %s3516_s25  ;;  %s3517_s25 = smov [#allocation8]  }
 0xe87   : > { %p3430_p6 = pneg %p3429_p1  ;;  %s3431_s29 = sshll.u32 %s3517_s25, 4  ;;  %s3432_s29 = int_to_ptr.vmem [resolvable:$false] %s3431_s29 }
 0xe88   : > { %s3433_s23 = scalar_lea.vmem %s3432_s29, 256  ;;  %p3434_p8 = scmp.lt.s32.totalorder %s4216_s19, %s3432_s29 }
 0xe89   : > { %p3435_p12 = scmp.lt.s32.totalorder %s3433_s23, %s3427_s11 }
 0xe8b   : > { %p3436_p3 = por %p3435_p12, %p3434_p8 }
 0xe8d   : > { %p3437_p7 = pnand %p3436_p3, %p3430_p6 }
 0xef4   : > { %v2832_v47 = vpop.permute.xlu0 %2831  ;;  %v2836_v36 = vpop.permute.xlu1 %2835 }
 0xef5   : > { %v2842_v45 = vsel %vm1036_vm4, %v2826_v12, %v2832_v47 }
 0xef6   : > { %v2843_v50 = vsel %vm1609_vm7, %v2842_v45, %v2836_v36 }
 0xef8   : > { %v2840_v46 = vpop.permute.xlu0 %2839 }
 0xef9   : > { %v2844_v13 = vsel %vm1611_vm8, %v2843_v50, %v2840_v46 }
 0xefa   : > { %v2845_v15 = vpack.c.bf16 %v2844_v13, %v2844_v13 }
 0xefc   : > { %3212 = vmatmul.mubr.msk.bf16.vlgmr.msra.gmra.mrb[36].mxu1 %vm418_vm0, %v2845_v15 }
 0xfcf   : > { %v2883_v7 = vpop.f32.mrb[36].mxu1 }
 0xfd0   : > { %v2884_v16 = vadd.f32 %v4004_v14, %v2883_v7  ;;  %v3213_v17 = vpop.f32.mrb[37].mxu1 }
 0xfd1   : > { %v2886_v18 = vpop.f32.mrb[38].mxu1 }
 0xfd2   : > { %v3214_v19 = vpop.f32.mrb[39].mxu1  ;;  %2889 = vst.msk [vmem:[%s401_s1] sm:$0xff] %vm418_vm0, %v2884_v16 }
 0xfd3   : > { %3440 = shalt.err (!%p3437_p7)
}
 0xfd4   : > { %s3441_s8 = scalar_lea.hbm %s4214_s12, 128  ;;  %s3445_s26 = scalar_lea.hbm %s4269_s10, 256 }
 0xfd5   : > { %p3442_p10 = scmp.ne.s32.totalorder %s4214_s12, %s3441_s8  ;;  %p3446_p0 = scmp.lt.u32.totalorder %s4214_s12, %s4269_s10 }
 0xfd6   : > { %p3447_p11 = scmp.lt.u32.totalorder %s3445_s26, %s3441_s8  ;;  %p3449_p2 = scmp.lt.u32.totalorder %s3441_s8, %s4214_s12 }
 0xfd7   : > { %p3443_p13 = pnand %p3442_p10, %p3686_p4 }
 0xfd8   : > { %p3448_p9 = por %p3447_p11, %p3446_p0 }
 0xfd9   : > { %p3444_p5 = pneg %p3443_p13 }
 0xfda   : > { %p3450_p1 = por %p3449_p2, %p3448_p9 }
 0xfdc   : > { %p3451_p6 = pnand %p3450_p1, %p3444_p5 }
 0xfde   : > { %3454 = shalt.err (!%p3451_p6)
}
 0xfdf   : > { %3225 = dma.vmem_to_hbm [thread:$0]  (%p3686_p4), %s4216_s19, 128, %s4214_s12, %s2891_s17  }
 0xfe0 PF: > { %s2916_s28 = sand.u32 1, %s3485_s13   ;;  %p4290_p8 = scmp.ne.s32.totalorder %s4277_s20, 0 }
 0xfe1   : > { %p4291_p12 = scmp.ge.s32.totalorder %s3497_s16, 2  ;;  %s2917_s11 = scalar_lea.sflag [#allocation4], %s2916_s28 }
 0xfe3   : > { %p3239_p3 = pnand %p4291_p12, %p4290_p8 }
 0xfe5   : > { %3480 = dma.done.wait (!%p3239_p3), %s2917_s11, 128  }
 0xfe6   : > { %3482 = vsyncadd (!%p3239_p3), %s2917_s11, 4294967168  ;;  %p24_p7 = scmp.ge.s32.totalorder %s3676_s30, 4   ;;  %s4292_s13 = smov %s3489_s14 }
 0xfe7   : > { %s4293_s14 = smov %s3493_s15  ;;  %s4294_s15 = smov %s3692_s22 }
 0xfe8   : > { %s4295_s16 = smov %s3676_s30  ;;  %26 = sbr.rel (!%p24_p7) target bundleno = 9 (0x9), region = 113 }
 0xfef   :  { %2922 = vsyncpa [#allocation3], 1 }
 0xff0   :  { %2924 = vsyncpa [#allocation3 + $0x1], 1 }
 0xff1   :  { %2925 = vsyncpa [#allocation6], 1 }
 0xff2   :  { %2926 = vsyncpa [#allocation4], 1 }
 0xff3   :  { %2928 = vsyncpa [#allocation4 + $0x1], 1 }

</bundles_post_ra>
